<compile_context>
chip_gen: v5e
topology: v5e:2x2
jax: 0.10.0
libtpu: 0.0.40
codegen_flags: <defaults>
</compile_context>

<pallas_src>
import functools

import jax
import jax.numpy as jnp
import numpy as np
from jax import lax
from jax.experimental import pallas as pl
from jax.experimental.pallas import tpu as pltpu


def _csc_head_kernel(delta_ref, x_ref, xmean_ref, wfc_ref, bias_ref, fc_ref, *, tile_c):
    """One (batch b, channel-row-tile ct) grid step.

    delta_ref : SMEM (1,)            f32 scalar `delta`
    x_ref     : VMEM (C, HW)  bf16   full feature map of image b (resident across ct)
    xmean_ref : VMEM (1, C)   f32    mean_HW(x) of image b (resident across ct)
    wfc_ref   : VMEM (C, NPAD) f32   full fc weight, lane-padded (resident across grid)
    bias_ref  : VMEM (1, NPAD) f32   fc bias, lane-padded (resident across grid)
    fc_ref    : VMEM (1, NPAD) f32   fc row for image b; lane-dense accumulator across ct
    """
    ct = pl.program_id(1)
    row0 = pl.multiple_of(ct * tile_c, tile_c)

    x_rows = x_ref[pl.ds(row0, tile_c), :]                       # (TILE_C, HW) bf16

    # Channel Gram rows on the MXU: S = X_rows @ X_full^T -> (TILE_C, C), bf16 in / f32 acc.
    s = lax.dot_general(
        x_rows, x_ref[...],
        dimension_numbers=(((1,), (1,)), ((), ())),
        preferred_element_type=jnp.float32)                      # (TILE_C, C) f32

    # Unnormalized row softmax; normalization is deferred to the pooled (TILE_C, 1) vector.
    m = jnp.max(s, axis=-1, keepdims=True)                       # (TILE_C, 1)
    e = jnp.exp(s - m)                                           # EUP, f32
    rowsum = jnp.sum(e, axis=-1, keepdims=True)                  # (TILE_C, 1)

    # mean_HW(att @ X) == att @ mean_HW(X): the second big matmul becomes a lane-broadcast
    # multiply by xmean followed by a lane (XLU) reduce.
    att_val = jnp.sum(e * xmean_ref[...], axis=-1, keepdims=True)  # (TILE_C, 1)

    # Residual term mean_HW(x_rows) for this channel tile (lane reduce, f32 math).
    res_mean = jnp.mean(x_rows.astype(jnp.float32), axis=-1, keepdims=True)  # (TILE_C, 1)

    delta = delta_ref[0]
    inv = pl.reciprocal(rowsum, approx=True)                     # EUP slot, ~free
    pooled = delta * att_val * inv + res_mean                    # (TILE_C, 1)

    # fc contribution of this channel tile: VPU multiply + sublane reduce against the
    # resident (lane-dense) weight slab -- no M=1 MXU matmul, no masked stores.
    w_rows = wfc_ref[pl.ds(row0, tile_c), :]                     # (TILE_C, NPAD) f32
    contrib = jnp.sum(pooled * w_rows, axis=0, keepdims=True)    # (1, NPAD)

    @pl.when(ct == 0)
    def _init():  # initialize the resident lane-dense output accumulator with the bias
        fc_ref[...] = bias_ref[...]

    fc_ref[...] += contrib


def csc_cls2_head(l4_feat, delta, fc_weight, fc_bias, *, tile_c=256, interpret=False):
    """Pallas forward of the CSC_cls2 channel-attention head.

    Args:
      l4_feat:   (B, C, H, W) layer4 feature map (backbone output stand-in).
      delta:     scalar learnable mixing weight (self.delta).
      fc_weight: (num_class, C)  -- PyTorch nn.Linear layout.
      fc_bias:   (num_class,)
      tile_c:    channel row-tile; 256 matches the v6e/v7x MXU, use 128 on v5e.
    Returns:
      (l4_out, fc_out) matching the tail of CSC_cls2.forward (l4 is unmodified).
    """
    B, C, H, W = l4_feat.shape
    HW = H * W
    num_class = int(fc_weight.shape[0])
    tile_c = min(tile_c, C)
    assert C % tile_c == 0 and tile_c % 8 == 0, "C must tile by a multiple of 8"

    # Lane-pad the fc output width to a multiple of 128 so every store in the kernel is
    # unmasked / lane-dense; the wrapper slices the pad off afterwards.
    npad = max(128, ((num_class + 127) // 128) * 128)

    # NCHW -> (B, C, HW) is a pure reshape (no HBM transpose): C rides the sublane axis,
    # HW the lane axis.  bf16 for the MXU operands; halves the resident block and the DMA.
    x_f32 = l4_feat.reshape(B, C, HW).astype(jnp.float32)
    x_flat = x_f32.astype(jnp.bfloat16)                          # (B, C, HW) bf16
    xmean = jnp.mean(x_f32, axis=-1).reshape(B, 1, C)            # (B, 1, C) f32, tiny

    w_fc = jnp.zeros((C, npad), jnp.float32).at[:, :num_class].set(
        jnp.transpose(fc_weight).astype(jnp.float32))            # (C, NPAD) f32, resident
    bias2d = jnp.zeros((1, npad), jnp.float32).at[:, :num_class].set(
        fc_bias.astype(jnp.float32))                             # (1, NPAD) f32
    delta_arr = jnp.asarray(delta, dtype=jnp.float32).reshape((1,))

    grid = (B, C // tile_c)

    cost = pl.CostEstimate(
        flops=int(2 * B * C * C * HW          # Gram matmul
                  + 2 * B * C * C             # xmean apply (VPU mul + reduce)
                  + 2 * B * C * npad),        # fc accumulation
        transcendentals=int(B * C * C),       # softmax exp
        bytes_accessed=int(B * C * HW * 2     # bf16 x read once per image
                           + B * C * 4        # xmean
                           + C * npad * 4     # fc weight (resident, one DMA)
                           + B * npad * 4),   # fc output
    )

    fc_out = pl.pallas_call(
        functools.partial(_csc_head_kernel, tile_c=tile_c),
        out_shape=jax.ShapeDtypeStruct((B, 1, npad), jnp.float32),
        grid_spec=pltpu.PrefetchScalarGridSpec(
            num_scalar_prefetch=0,
            grid=grid,
            in_specs=[
                pl.BlockSpec(memory_space=pltpu.MemorySpace.SMEM),          # delta
                pl.BlockSpec((None, C, HW), lambda b, ct: (b, 0, 0)),       # x: full (C,HW) per image
                pl.BlockSpec((None, 1, C), lambda b, ct: (b, 0, 0)),        # xmean per image
                pl.BlockSpec((C, npad), lambda b, ct: (0, 0)),              # fc weight, fully resident
                pl.BlockSpec((1, npad), lambda b, ct: (0, 0)),              # fc bias
            ],
            out_specs=pl.BlockSpec((None, 1, npad), lambda b, ct: (b, 0, 0)),
        ),
        compiler_params=pltpu.CompilerParams(
            # batch axis shards across TensorCores on v7x; channel-tile axis is an
            # accumulating (output-resident) reduction so it must be "arbitrary".
            dimension_semantics=("parallel", "arbitrary"),
            # 32 MiB leaves headroom on every generation, including v7x's 64 MiB VMEM.
            vmem_limit_bytes=32 * 1024 * 1024,
        ),
        cost_estimate=cost,
        interpret=interpret,
    )(delta_arr, x_flat, xmean, w_fc, bias2d)

    return l4_feat, fc_out.reshape(B, npad)[:, :num_class]


def csc_cls2_head_reference(l4_feat, delta, fc_weight, fc_bias):
    """Pure-JAX reference matching the PyTorch forward (post-backbone)."""
    B, C, H, W = l4_feat.shape
    xf = l4_feat.reshape(B, C, H * W).astype(jnp.float32)
    att = jnp.einsum("bcs,bds->bcd", xf, xf)          # bmm(att1, att2)
    att = jax.nn.softmax(att, axis=-1)
    att_out = jnp.einsum("bcd,bds->bcs", att, xf)      # bmm(att, l4)
    z = delta * att_out + xf
    pooled = jnp.mean(z, axis=-1)                      # adaptive avg-pool to (1,1)
    fc = pooled @ fc_weight.T.astype(jnp.float32) + fc_bias.astype(jnp.float32)
    return fc


if __name__ == "__main__":
    # Small, deterministic stand-in for the layer4 feature map + head parameters.
    B, C, H, W = 2, 256, 16, 16
    NUM_CLASS = 16

    key = jax.random.PRNGKey(0)
    k1, k2, k3 = jax.random.split(key, 3)
    l4_feat = 0.1 * jax.random.normal(k1, (B, C, H, W), dtype=jnp.float32)
    fc_w = 0.05 * jax.random.normal(k2, (NUM_CLASS, C), dtype=jnp.float32)
    fc_b = 0.1 * jax.random.normal(k3, (NUM_CLASS,), dtype=jnp.float32)
    delta = jnp.float32(0.1)

    ref = csc_cls2_head_reference(l4_feat, delta, fc_w, fc_b)

    # Exercise both the multi-tile accumulation path (tile_c=128, the v5e setting)
    # and the single-tile / MXU-wide path (tile_c=256, the v6e/v7x default).
    for tc in (128, 256):
        l4_out, fc_out = csc_cls2_head(l4_feat, delta, fc_w, fc_b, tile_c=tc)
        jax.block_until_ready((l4_out, fc_out))
        np.testing.assert_allclose(np.asarray(fc_out), np.asarray(ref), rtol=2e-2, atol=2e-3)
        np.testing.assert_allclose(np.asarray(l4_out), np.asarray(l4_feat))

    print("KERNEL_OK")
</pallas_src>

<mosaic_0001>
module attributes {stable_mosaic.version = 11 : i64} {
  func.func @_csc_head_kernel(%arg0: i32, %arg1: i32, %arg2: memref<1xf32, #tpu.memory_space<smem>>, %arg3: memref<1x256x256xbf16, #tpu.memory_space<vmem>>, %arg4: memref<1x1x256xf32, #tpu.memory_space<vmem>>, %arg5: memref<256x128xf32, #tpu.memory_space<vmem>>, %arg6: memref<1x128xf32, #tpu.memory_space<vmem>>, %arg7: memref<1x1x128xf32, #tpu.memory_space<vmem>>) attributes {dimension_semantics = [#tpu.dimension_semantics<parallel>, #tpu.dimension_semantics<arbitrary>], iteration_bounds = array<i64: 2, 2>, scalar_prefetch = 0 : i64, scratch_operands = 0 : i64, tpu.core_type = #tpu.core_type<tc>, window_params = [{transform_indices = @transform_0, window_bounds = array<i64: 1>}, {transform_indices = @transform_1, window_bounds = array<i64: 1, 256, 256>}, {transform_indices = @transform_2, window_bounds = array<i64: 1, 1, 256>}, {pipeline_mode = #tpu.pipeline_mode<synchronous>, transform_indices = @transform_3, window_bounds = array<i64: 256, 128>}, {pipeline_mode = #tpu.pipeline_mode<synchronous>, transform_indices = @transform_4, window_bounds = array<i64: 1, 128>}, {transform_indices = @transform_5, window_bounds = array<i64: 1, 1, 128>}]} {
    %c128_i32 = arith.constant 128 : i32
    %0 = arith.muli %arg1, %c128_i32 : i32
    %1 = tpu.assume_multiple %0, 128 : i32
    %c0 = arith.constant 0 : index
    %2 = arith.index_cast %1 : i32 to index
    %c0_0 = arith.constant 0 : index
    %3 = vector.load %arg3[%c0, %2, %c0_0] : memref<1x256x256xbf16, #tpu.memory_space<vmem>>, vector<1x128x256xbf16>
    %4 = vector.shape_cast %3 : vector<1x128x256xbf16> to vector<128x256xbf16>
    %c0_1 = arith.constant 0 : index
    %c0_2 = arith.constant 0 : index
    %c0_3 = arith.constant 0 : index
    %5 = vector.load %arg3[%c0_1, %c0_2, %c0_3] : memref<1x256x256xbf16, #tpu.memory_space<vmem>>, vector<1x256x256xbf16>
    %6 = vector.shape_cast %5 : vector<1x256x256xbf16> to vector<256x256xbf16>
    %cst = arith.constant dense<0.000000e+00> : vector<128x256xf32>
    %7 = tpu.matmul %4, %6, %cst {dimension_numbers = #tpu.dot_dimension_numbers<[1], [1], [0], [0], [0, 0, 1, 0], [], []>} : vector<128x256xbf16>, vector<256x256xbf16>, vector<128x256xf32> -> vector<128x256xf32>
    %cst_4 = arith.constant dense<0xFF800000> : vector<128xf32>
    %8 = vector.multi_reduction <maximumf>, %7, %cst_4 [1] : vector<128x256xf32> to vector<128xf32>
    %9 = vector.shape_cast %8 : vector<128xf32> to vector<128x1xf32>
    %10 = vector.broadcast %9 : vector<128x1xf32> to vector<128x256xf32>
    %11 = arith.subf %7, %10 : vector<128x256xf32>
    %12 = math.exp %11 : vector<128x256xf32>
    %cst_5 = arith.constant dense<0.000000e+00> : vector<128xf32>
    %13 = vector.multi_reduction <add>, %12, %cst_5 [1] : vector<128x256xf32> to vector<128xf32>
    %14 = vector.shape_cast %13 : vector<128xf32> to vector<128x1xf32>
    %c0_6 = arith.constant 0 : index
    %c0_7 = arith.constant 0 : index
    %c0_8 = arith.constant 0 : index
    %15 = vector.load %arg4[%c0_6, %c0_7, %c0_8] : memref<1x1x256xf32, #tpu.memory_space<vmem>>, vector<1x1x256xf32>
    %16 = vector.shape_cast %15 : vector<1x1x256xf32> to vector<1x256xf32>
    %17 = vector.broadcast %16 : vector<1x256xf32> to vector<128x256xf32>
    %18 = arith.mulf %12, %17 : vector<128x256xf32>
    %cst_9 = arith.constant dense<0.000000e+00> : vector<128xf32>
    %19 = vector.multi_reduction <add>, %18, %cst_9 [1] : vector<128x256xf32> to vector<128xf32>
    %20 = vector.shape_cast %19 : vector<128xf32> to vector<128x1xf32>
    %21 = arith.extf %4 : vector<128x256xbf16> to vector<128x256xf32>
    %cst_10 = arith.constant dense<0.000000e+00> : vector<128xf32>
    %22 = vector.multi_reduction <add>, %21, %cst_10 [1] : vector<128x256xf32> to vector<128xf32>
    %23 = vector.shape_cast %22 : vector<128xf32> to vector<128x1xf32>
    %cst_11 = arith.constant 2.560000e+02 : f32
    %24 = vector.broadcast %cst_11 : f32 to vector<128x1xf32>
    %25 = arith.divf %23, %24 : vector<128x1xf32>
    %c0_12 = arith.constant 0 : index
    %26 = memref.load %arg2[%c0_12] : memref<1xf32, #tpu.memory_space<smem>>
    %27 = tpu.reciprocal %14 {approx = true} : vector<128x1xf32> -> vector<128x1xf32>
    %28 = vector.broadcast %26 : f32 to vector<128x1xf32>
    %29 = arith.mulf %28, %20 : vector<128x1xf32>
    %30 = arith.mulf %29, %27 : vector<128x1xf32>
    %31 = arith.addf %30, %25 : vector<128x1xf32>
    %32 = arith.index_cast %1 : i32 to index
    %c0_13 = arith.constant 0 : index
    %33 = vector.load %arg5[%32, %c0_13] : memref<256x128xf32, #tpu.memory_space<vmem>>, vector<128x128xf32>
    %34 = vector.broadcast %31 : vector<128x1xf32> to vector<128x128xf32>
    %35 = arith.mulf %34, %33 : vector<128x128xf32>
    %cst_14 = arith.constant dense<0.000000e+00> : vector<128xf32>
    %36 = vector.multi_reduction <add>, %35, %cst_14 [0] : vector<128x128xf32> to vector<128xf32>
    %37 = vector.shape_cast %36 : vector<128xf32> to vector<1x128xf32>
    %c0_i32 = arith.constant 0 : i32
    %38 = arith.cmpi eq, %arg1, %c0_i32 : i32
    %39 = arith.extui %38 : i1 to i32
    %c0_i32_15 = arith.constant 0 : i32
    %40 = arith.cmpi ne, %39, %c0_i32_15 : i32
    scf.if %40 {
      %c0_22 = arith.constant 0 : index
      %c0_23 = arith.constant 0 : index
      %47 = vector.load %arg6[%c0_22, %c0_23] : memref<1x128xf32, #tpu.memory_space<vmem>>, vector<1x128xf32>
      %c0_24 = arith.constant 0 : index
      %c0_25 = arith.constant 0 : index
      %c0_26 = arith.constant 0 : index
      %48 = vector.load %arg7[%c0_24, %c0_25, %c0_26] : memref<1x1x128xf32, #tpu.memory_space<vmem>>, vector<1x1x128xf32>
      %49 = vector.shape_cast %48 : vector<1x1x128xf32> to vector<1x128xf32>
      %50 = vector.shape_cast %47 : vector<1x128xf32> to vector<1x1x128xf32>
      tpu.vector_store %arg7[%c0_24, %c0_25, %c0_26], %50 {strides = array<i32>} : memref<1x1x128xf32, #tpu.memory_space<vmem>>, vector<1x1x128xf32>,
    } else {
    }
    %c0_16 = arith.constant 0 : index
    %c0_17 = arith.constant 0 : index
    %c0_18 = arith.constant 0 : index
    %41 = vector.load %arg7[%c0_16, %c0_17, %c0_18] : memref<1x1x128xf32, #tpu.memory_space<vmem>>, vector<1x1x128xf32>
    %42 = vector.shape_cast %41 : vector<1x1x128xf32> to vector<1x128xf32>
    %43 = arith.addf %42, %37 : vector<1x128xf32>
    %c0_19 = arith.constant 0 : index
    %c0_20 = arith.constant 0 : index
    %c0_21 = arith.constant 0 : index
    %44 = vector.load %arg7[%c0_19, %c0_20, %c0_21] : memref<1x1x128xf32, #tpu.memory_space<vmem>>, vector<1x1x128xf32>
    %45 = vector.shape_cast %44 : vector<1x1x128xf32> to vector<1x128xf32>
    %46 = vector.shape_cast %43 : vector<1x128xf32> to vector<1x1x128xf32>
    tpu.vector_store %arg7[%c0_19, %c0_20, %c0_21], %46 {strides = array<i32>} : memref<1x1x128xf32, #tpu.memory_space<vmem>>, vector<1x1x128xf32>,
    return
  }
  func.func @transform_0(%arg0: i32, %arg1: i32) -> i32 {
    %c0_i32 = arith.constant 0 : i32
    %c0_i32_0 = arith.constant 0 : i32
    return %c0_i32 : i32
  }
  func.func @transform_1(%arg0: i32, %arg1: i32) -> (i32, i32, i32) {
    %c0_i32 = arith.constant 0 : i32
    %c0_i32_0 = arith.constant 0 : i32
    %c0_i32_1 = arith.constant 0 : i32
    return %arg0, %c0_i32, %c0_i32_0 : i32, i32, i32
  }
  func.func @transform_2(%arg0: i32, %arg1: i32) -> (i32, i32, i32) {
    %c0_i32 = arith.constant 0 : i32
    %c0_i32_0 = arith.constant 0 : i32
    %c0_i32_1 = arith.constant 0 : i32
    return %arg0, %c0_i32, %c0_i32_0 : i32, i32, i32
  }
  func.func @transform_3(%arg0: i32, %arg1: i32) -> (i32, i32) {
    %c0_i32 = arith.constant 0 : i32
    %c0_i32_0 = arith.constant 0 : i32
    %c0_i32_1 = arith.constant 0 : i32
    return %c0_i32, %c0_i32_0 : i32, i32
  }
  func.func @transform_4(%arg0: i32, %arg1: i32) -> (i32, i32) {
    %c0_i32 = arith.constant 0 : i32
    %c0_i32_0 = arith.constant 0 : i32
    %c0_i32_1 = arith.constant 0 : i32
    return %c0_i32, %c0_i32_0 : i32, i32
  }
  func.func @transform_5(%arg0: i32, %arg1: i32) -> (i32, i32, i32) {
    %c0_i32 = arith.constant 0 : i32
    %c0_i32_0 = arith.constant 0 : i32
    %c0_i32_1 = arith.constant 0 : i32
    return %arg0, %c0_i32, %c0_i32_0 : i32, i32, i32
  }
}

</mosaic_0001>

<bundles_post_ra>
// kernel: tpu_custom_call.1
= control target key start
LH: loop header
LB: loop body
LE: loop exit
PB: predicated region body
PF: predicated region fallthrough
CT: control target
= control target key end

     0   :  { %s2699_s0 = inlined_call_operand.<no memory space> [shape: f32[1], index: 0, kind: input, shape index: {}]   ;;  %s2700_s1 = inlined_call_operand.hbm [shape: bf16[2,256,256], index: 1, kind: input, shape index: {}]   ;;  %s2701_s2 = inlined_call_operand.hbm [shape: f32[2,1,256], index: 2, kind: input, shape index: {}]   ;;  %s2702_s3 = inlined_call_operand.hbm [shape: f32[256,128], index: 3, kind: input, shape index: {}]   ;;  %s2703_s4 = inlined_call_operand.vmem [shape: f32[1,128], index: 4, kind: input, shape index: {}]   ;;  %s2704_s5 = inlined_call_operand.hbm [shape: f32[2,1,128], index: 5, kind: output, shape index: {}]  }
   0x1   :  { %2713 = sst [smem:[#allocation20_spill]] %s2702_s3 }
   0x2   :  { %10 = sst [smem:[#allocation2]] %s2699_s0 }
   0x3   :  { %11 = vsyncpa [#allocation4], 0 }
   0x4   :  { %13 = vsyncpa [#allocation4 + $0x1], 0 }
   0x5   :  { %14 = vsyncpa [#allocation7], 0 }
   0x6   :  { %16 = vsyncpa [#allocation7 + $0x1], 0 }
   0x7   :  { %17 = vsyncpa [#allocation5], 0 }
   0x8   :  { %19 = vsyncpa [#allocation5 + $0x1], 0  ;;  %s2130_s20 = smov 0   ;;  %s2132_s21 = smov 0  }
   0x9   :  { %s2134_s22 = smov 0   ;;  %s2136_s23 = smov 0  }
   0xa   :  { %s2138_s24 = smov 0   ;;  %s2140_s25 = smov 0  }
   0xb   :  { %s2142_s26 = smov 0   ;;  %s2144_s0 = smov 0  }
   0xc LB: > { %2714 = sst [smem:[#allocation14_spill]] %s2063_s20  ;;  %s2171_s27 = sadd.s32 4294967295, %s2091_s0   ;;  %s2091_s0 = sphi %s2144_s0, %s25_s0   ;;  %s2087_s26 = sphi %s2142_s26, %s2738_s26   ;;  %s2083_s25 = sphi %s2140_s25, %s2732_s25   ;;  %s2079_s24 = sphi %s2138_s24, %s2737_s24   ;;  %s2075_s23 = sphi %s2136_s23, %s2731_s23   ;;  %s2071_s22 = sphi %s2134_s22, %s2736_s22   ;;  %s2067_s21 = sphi %s2132_s21, %s2735_s21   ;;  %s2063_s20 = sphi %s2130_s20, %s2734_s20  }
   0xd   : > { %2715 = sst [smem:[#allocation15_spill]] %s2083_s25  ;;  %s1439_s28 = sadd.s32 4294967294, %s2091_s0  }
   0xe   : > { %p78_p0 = scmp.ne.s32.totalorder %s2067_s21, %s2063_s20  ;;  %p79_p1 = scmp.eq.s32.totalorder %s2171_s27, 0 }
   0xf   : > { %p170_p2 = scmp.eq.s32.totalorder %s2171_s27, 3  ;;  %p176_p3 = scmp.eq.s32.totalorder %s1439_s28, 3 }
  0x10   : > { %p2180_p4 = por %p79_p1, %p78_p0  ;;  %p1440_p5 = scmp.ge.s32.totalorder %s2091_s0, 1 }
  0x11   : > { %p2185_p6 = por %p176_p3, %p78_p0  ;;  %p183_p7 = scmp.lt.s32.totalorder %s2091_s0, 5 }
  0x12   : > { %s2719_s3 = sld [smem:[#allocation20_spill]]  ;;  %s2093_s10 = smov [#allocation8]  }
  0x13   : > { %s2717_s30 = scalar_select %p2185_p6, 1, 0 }
  0x14   : > { %p2193_p8 = pnand %p1440_p5, %p183_p7  ;;  %s199_s11 = sshll.u32 %s2093_s10, 4  ;;  %s200_s11 = int_to_ptr.vmem [resolvable:$true] %s199_s11 }
  0x15   : > { %2718 = sst [smem:[#allocation16_spill]] %s2717_s30  ;;  %s2705_s12 = smov 128  }
  0x16   : > { %p1710_p9 = pneg %p2193_p8  ;;  %s2706_s13 = smov 8  }
  0x17   : > { %s34_s14 = sadd.s32 1, %s2083_s25  ;;  %s37_s15 = sadd.s32 1, %s2087_s26 }
  0x18   : > { %s197_s8 = sshll.u32 %s2719_s3, 4  ;;  %p1711_p10 = pnand %p1710_p9, %p79_p1  ;;  %s198_s8 = int_to_ptr.hbm [resolvable:$true] %s197_s8 }
  0x19   : > { %p35_p11 = scmp.ge.s32.totalorder %s34_s14, 2  ;;  %s65_s16 = sadd.s32 1, %s2071_s22 }
  0x1a   : > { %1713 = dma.hbm_to_vmem [thread:$0]  (!%p1711_p10), %s198_s8, 4096, %s200_s11, [#allocation7], %s2705_s12, %s2705_s12, %s2706_s13  }
  0x1b   : > { %p72_p12 = scmp.ne.s32.totalorder %s2071_s22, %s2067_s21  ;;  %s2740_s14 = smov (%p35_p11, %s34_s14), 0 }
  0x1c   : > { %2721 = sst [smem:[#allocation17_spill]] %s2740_s14  ;;  %s2742_s15 = smov (!%p35_p11, %s37_s15), %s2087_s26 }
  0x1d   : > { %p73_p13 = scmp.eq.s32.totalorder %s2091_s0, 0  ;;  %p2215_p0 = por %p170_p2, %p72_p12 }
  0x1e   : > { %p39_p3 = scmp.ge.s32.totalorder %s2742_s15, 2  ;;  %p1726_p5 = scmp.lt.s32.totalorder %s2091_s0, 4 }
  0x1f   : > { %s2722_s17 = scalar_select %p2215_p0, 1, 0 }
  0x20   : > { %p2220_p7 = por %p73_p13, %p72_p12  ;;  %s216_s19 = sand.u32 1, %s2071_s22  }
  0x21   : > { %2723 = sst [smem:[#allocation18_spill]] %s2722_s17  ;;  %s2744_s15 = smov (%p39_p3, %s2742_s15), 0 }
  0x22   : > { %2725 = sst [smem:[#allocation19_spill]] %s2744_s15  ;;  %s1443_s28 = sshll.u32 %s216_s19, 8 }
  0x23   : > { %s62_s6 = ssub.s32 %s2087_s26, %s2744_s15  ;;  %s1650_s7 = sshll.u32 %s2087_s26, 8 }
  0x24   : > { %p63_p2 = scmp.eq.s32.totalorder %s62_s6, 0  ;;  %s225_s11 = scalar_lea.hbm %s2700_s1, %s1650_s7 }
  0x25   : > { %s220_s12 = scalar_lea.vmem [#allocation3], %s1443_s28  ;;  %s226_s14 = sshll.u32 %s225_s11, 4  ;;  %s227_s14 = int_to_ptr.hbm [resolvable:$true] %s226_s14 }
  0x26   : > { %s228_s13 = sshll.u32 %s220_s12, 4  ;;  %p1715_p9 = pnand %p1726_p5, %p2220_p7  ;;  %s229_s13 = int_to_ptr.vmem [resolvable:$true] %s228_s13 }
  0x27   : > { %s2234_s3 = scalar_select %p63_p2, %s2071_s22, %s65_s16  }
  0x28   : > { %s238_s25 = sand.u32 1, %s2091_s0   ;;  %s1446_s30 = sshll.u32 %s216_s19, 1 }
  0x29   : > { %s217_s20 = scalar_lea.sflag [#allocation4], %s216_s19  ;;  %s2726_s15 = smov 8  }
  0x2a   : > { %s2727_s6 = smov 128   ;;  %s1447_s17 = sshll.u32 %s2087_s26, 1 }
  0x2b   : > { %1717 = dma.hbm_to_vmem [thread:$0]  (!%p1715_p9), %s227_s14, 4096, %s229_s13, %s217_s20, %s2727_s6, %s2727_s6, %s2726_s15  }
  0x2c   : > { %s246_s12 = scalar_lea.hbm %s2701_s2, %s1447_s17  ;;  %s242_s16 = scalar_lea.vmem [#allocation6], %s1446_s30 }
  0x2d   : > { %s250_s28 = sshll.u32 %s242_s16, 4  ;;  %s248_s10 = sshll.u32 %s246_s12, 4  ;;  %s251_s28 = int_to_ptr.vmem [resolvable:$true] %s250_s28  ;;  %s249_s10 = int_to_ptr.hbm [resolvable:$true] %s248_s10 }
  0x2e   : > { %s239_s18 = scalar_lea.sflag [#allocation7], %s238_s25  ;;  %259 = sbr.rel (%p2193_p8) target bundleno = 672 (0x2a0), region = 40 }
  0x2f   : > { %1720 = dma.hbm_to_vmem [thread:$0]  (!%p1715_p9), %s249_s10, 32, %s251_s28, %s239_s18  }
  0x30   : > { %s2251_s19 = sand.u32 (!%p2193_p8), 1, %s2067_s21  }
  0x31   : > { %s1449_s20 = sshll.u32 (!%p2193_p8), %s2251_s19, 8  ;;  %s262_s13 = scalar_lea.sflag (!%p2193_p8), [#allocation4], %s2251_s19 }
  0x32   : > { %s2255_s14 = scalar_lea.vmem (!%p2193_p8), [#allocation3], %s1449_s20 }
  0x33   : > { %2046 = dma.done.wait (%p2180_p4), %s262_s13, 4096  }
  0x34   : > { %2048 = vsyncadd (%p2180_p4), %s262_s13, 4294963200  ;;  %s271_s25 = sand.u32 1, %s2171_s27   ;;  %s1450_s30 = sshll.u32 %s2251_s19, 1 }
  0x35   : > { %s272_s9 = scalar_lea.sflag [#allocation7], %s271_s25  ;;  %s2263_s15 = scalar_lea.vmem [#allocation6], %s1450_s30 }
  0x36   : > { %2050 = dma.done.wait (%p2180_p4), %s272_s9, 32  }
  0x37   : > { %2052 = vsyncadd (%p2180_p4), %s272_s9, 4294967264 }
  0x38   : > { %2054 = dma.done.wait (%p79_p1), [#allocation7], 4096  }
  0x39   : > { %2056 = vsyncadd (%p79_p1), [#allocation7], 4294963200  ;;  %v1577_v0 = vld [vmem:[%s2255_s14 + $0x70] sm:$0xf]  ;;  %v1683_v1 = vld [vmem:[%s2255_s14 + $0x74] sm:$0xf0] }
  0x3a   : > { %v1682_v2 = vld [vmem:[%s2255_s14 + $0x74] sm:$0xf]  ;;  %v1578_v3 = vor.u32 %v1683_v1, %v1577_v0  ;;  %v1579_v4 = vld [vmem:[%s2255_s14 + $0x78] sm:$0xf0]  ;;  %v1641_v5 = vld [vmem:[%s2255_s14 + $0xf0] sm:$0xf] }
  0x3b   : > { %v1699_v6 = vld [vmem:[%s2255_s14 + $0xf4] sm:$0xf0]  ;;  %v1582_v7 = vor.u32 %v1682_v2, %v1579_v4  ;;  %v1698_v9 = vld [vmem:[%s2255_s14 + $0xf4] sm:$0xf]  ;;  %v1643_v10 = vld [vmem:[%s2255_s14 + $0xf8] sm:$0xf0] }
  0x3c   : > { %v1642_v8 = vor.u32 %v1699_v6, %v1641_v5  ;;  %606 = vmatpush.bf16.xpose.msra.mxu0 %v1578_v3  ;;  %v1646_v11 = vor.u32 %v1698_v9, %v1643_v10  ;;  %v1569_v12 = vld [vmem:[%s2255_s14 + $0x60] sm:$0xf]  ;;  %v1681_v13 = vld [vmem:[%s2255_s14 + $0x64] sm:$0xf0]  ;;  %v1680_v14 = vld [vmem:[%s2255_s14 + $0x64] sm:$0xf] }
  0x3d   : > { %655 = vmatpush.bf16.xpose.msra.mxu1 %v1582_v7  ;;  %v1571_v15 = vld [vmem:[%s2255_s14 + $0x68] sm:$0xf0]  ;;  %v1633_v16 = vld [vmem:[%s2255_s14 + $0xe0] sm:$0xf]  ;;  %v1697_v17 = vld [vmem:[%s2255_s14 + $0xe4] sm:$0xf0]  ;;  %v1570_v20 = vor.u32 %v1681_v13, %v1569_v12 }
  0x3e   : > { %704 = vmatpush.bf16.xpose.msra.mxu2 %v1642_v8  ;;  %753 = vmatpush.bf16.xpose.msra.mxu3 %v1646_v11  ;;  %v1696_v18 = vld [vmem:[%s2255_s14 + $0xe4] sm:$0xf]  ;;  %v1635_v19 = vld [vmem:[%s2255_s14 + $0xe8] sm:$0xf0]  ;;  %v1574_v21 = vor.u32 %v1680_v14, %v1571_v15  ;;  %v1634_v22 = vor.u32 %v1697_v17, %v1633_v16  ;;  %v1561_v24 = vld [vmem:[%s2255_s14 + $0x50] sm:$0xf] }
  0x3f   : > { %v1638_v23 = vor.u32 %v1696_v18, %v1635_v19  ;;  %v1679_v25 = vld [vmem:[%s2255_s14 + $0x54] sm:$0xf0]  ;;  %v1678_v26 = vld [vmem:[%s2255_s14 + $0x54] sm:$0xf]  ;;  %v1563_v27 = vld [vmem:[%s2255_s14 + $0x58] sm:$0xf0] }
  0x40   : > { %v1625_v28 = vld [vmem:[%s2255_s14 + $0xd0] sm:$0xf]  ;;  %v1695_v29 = vld [vmem:[%s2255_s14 + $0xd4] sm:$0xf0]  ;;  %v1694_v30 = vld [vmem:[%s2255_s14 + $0xd4] sm:$0xf]  ;;  %v1562_v32 = vor.u32 %v1679_v25, %v1561_v24  ;;  %v1566_v33 = vor.u32 %v1678_v26, %v1563_v27 }
  0x41   : > { %v1627_v31 = vld [vmem:[%s2255_s14 + $0xd8] sm:$0xf0]  ;;  %v1626_v34 = vor.u32 %v1695_v29, %v1625_v28  ;;  %v1553_v36 = vld [vmem:[%s2255_s14 + $0x40] sm:$0xf]  ;;  %v1677_v37 = vld [vmem:[%s2255_s14 + $0x44] sm:$0xf0] }
  0x42   : > { %v1630_v35 = vor.u32 %v1694_v30, %v1627_v31  ;;  %v1676_v38 = vld [vmem:[%s2255_s14 + $0x44] sm:$0xf]  ;;  %v1555_v39 = vld [vmem:[%s2255_s14 + $0x48] sm:$0xf0]  ;;  %v1617_v40 = vld [vmem:[%s2255_s14 + $0xc0] sm:$0xf]  ;;  %v1554_v44 = vor.u32 %v1677_v37, %v1553_v36 }
  0x43   : > { %v1693_v41 = vld [vmem:[%s2255_s14 + $0xc4] sm:$0xf0]  ;;  %v1692_v42 = vld [vmem:[%s2255_s14 + $0xc4] sm:$0xf]  ;;  %v1619_v43 = vld [vmem:[%s2255_s14 + $0xc8] sm:$0xf0]  ;;  %v1558_v45 = vor.u32 %v1676_v38, %v1555_v39 }
  0x44   : > { %607 = vmatpush.bf16.xpose.msra.mxu0 %v1570_v20  ;;  %v1618_v46 = vor.u32 %v1693_v41, %v1617_v40  ;;  %v1622_v47 = vor.u32 %v1692_v42, %v1619_v43  ;;  %v1545_v48 = vld [vmem:[%s2255_s14 + $0x30] sm:$0xf]  ;;  %v1675_v49 = vld [vmem:[%s2255_s14 + $0x34] sm:$0xf0]  ;;  %v1674_v50 = vld [vmem:[%s2255_s14 + $0x34] sm:$0xf] }
  0x45   : > { %656 = vmatpush.bf16.xpose.msra.mxu1 %v1574_v21  ;;  %v1547_v51 = vld [vmem:[%s2255_s14 + $0x38] sm:$0xf0]  ;;  %v1609_v52 = vld [vmem:[%s2255_s14 + $0xb0] sm:$0xf]  ;;  %v1691_v53 = vld [vmem:[%s2255_s14 + $0xb4] sm:$0xf0]  ;;  %v1546_v56 = vor.u32 %v1675_v49, %v1545_v48 }
  0x46   : > { %705 = vmatpush.bf16.xpose.msra.mxu2 %v1634_v22  ;;  %754 = vmatpush.bf16.xpose.msra.mxu3 %v1638_v23  ;;  %v1690_v54 = vld [vmem:[%s2255_s14 + $0xb4] sm:$0xf]  ;;  %v1611_v55 = vld [vmem:[%s2255_s14 + $0xb8] sm:$0xf0]  ;;  %v1550_v57 = vor.u32 %v1674_v50, %v1547_v51  ;;  %v1610_v58 = vor.u32 %v1691_v53, %v1609_v52  ;;  %v1537_v60 = vld [vmem:[%s2255_s14 + $0x20] sm:$0xf] }
  0x47   : > { %v1614_v59 = vor.u32 %v1690_v54, %v1611_v55  ;;  %v1673_v61 = vld [vmem:[%s2255_s14 + $0x24] sm:$0xf0]  ;;  %v1672_v62 = vld [vmem:[%s2255_s14 + $0x24] sm:$0xf]  ;;  %v1539_v63 = vld [vmem:[%s2255_s14 + $0x28] sm:$0xf0] }
  0x48   : > { %v1601_v0 = vld [vmem:[%s2255_s14 + $0xa0] sm:$0xf]  ;;  %v1689_v1 = vld [vmem:[%s2255_s14 + $0xa4] sm:$0xf0]  ;;  %v1688_v2 = vld [vmem:[%s2255_s14 + $0xa4] sm:$0xf]  ;;  %v1538_v4 = vor.u32 %v1673_v61, %v1537_v60  ;;  %v1542_v5 = vor.u32 %v1672_v62, %v1539_v63 }
  0x49   : > { %v1603_v3 = vld [vmem:[%s2255_s14 + $0xa8] sm:$0xf0]  ;;  %v1602_v6 = vor.u32 %v1689_v1, %v1601_v0  ;;  %v1529_v8 = vld [vmem:[%s2255_s14 + $0x10] sm:$0xf]  ;;  %v1671_v9 = vld [vmem:[%s2255_s14 + $0x14] sm:$0xf0] }
  0x4a   : > { %v1606_v7 = vor.u32 %v1688_v2, %v1603_v3  ;;  %v1670_v10 = vld [vmem:[%s2255_s14 + $0x14] sm:$0xf]  ;;  %v1531_v11 = vld [vmem:[%s2255_s14 + $0x18] sm:$0xf0]  ;;  %v1593_v12 = vld [vmem:[%s2255_s14 + $0x90] sm:$0xf]  ;;  %v1530_v16 = vor.u32 %v1671_v9, %v1529_v8 }
  0x4b   : > { %v1687_v13 = vld [vmem:[%s2255_s14 + $0x94] sm:$0xf0]  ;;  %v1686_v14 = vld [vmem:[%s2255_s14 + $0x94] sm:$0xf]  ;;  %v1595_v15 = vld [vmem:[%s2255_s14 + $0x98] sm:$0xf0]  ;;  %v1534_v17 = vor.u32 %v1670_v10, %v1531_v11 }
  0x4c   : > { %608 = vmatpush.bf16.xpose.msra.mxu0 %v1562_v32  ;;  %v1594_v18 = vor.u32 %v1687_v13, %v1593_v12  ;;  %v1598_v19 = vor.u32 %v1686_v14, %v1595_v15  ;;  %s1452_s27 = sshll.u32 %s2075_s23, 7  ;;  %v1521_v20 = vld [vmem:[%s2255_s14] sm:$0xf]  ;;  %v1669_v21 = vld [vmem:[%s2255_s14 + $0x4] sm:$0xf0]  ;;  %s1183_s17 = sld [smem:[#allocation2]] }
  0x4d   : > { %657 = vmatpush.bf16.xpose.msra.mxu1 %v1566_v33  ;;  %v1668_v22 = vld [vmem:[%s2255_s14 + $0x4] sm:$0xf]  ;;  %v1523_v23 = vld [vmem:[%s2255_s14 + $0x8] sm:$0xf0]  ;;  %v1585_v24 = vld [vmem:[%s2255_s14 + $0x80] sm:$0xf]  ;;  %v1522_v28 = vor.u32 %v1669_v21, %v1521_v20  ;;  %s2341_s29 = scalar_lea.vmem %s2255_s14, %s1452_s27 [#allocation3] }
  0x4e   : > { %706 = vmatpush.bf16.xpose.msra.mxu2 %v1626_v34  ;;  %755 = vmatpush.bf16.xpose.msra.mxu3 %v1630_v35  ;;  %v1685_v25 = vld [vmem:[%s2255_s14 + $0x84] sm:$0xf0]  ;;  %v1684_v26 = vld [vmem:[%s2255_s14 + $0x84] sm:$0xf]  ;;  %v1587_v27 = vld [vmem:[%s2255_s14 + $0x88] sm:$0xf0]  ;;  %v1526_v29 = vor.u32 %v1668_v22, %v1523_v23 }
  0x4f   : > { %v1586_v30 = vor.u32 %v1685_v25, %v1585_v24  ;;  %v1590_v31 = vor.u32 %v1684_v26, %v1587_v27  ;;  %v1457_v32 = vld [vmem:[%s2341_s29] sm:$0xf]  ;;  %v1653_v33 = vld [vmem:[%s2341_s29 + $0x4] sm:$0xf0]  ;;  %v1652_v34 = vld [vmem:[%s2341_s29 + $0x4] sm:$0xf] }
  0x50   : > { %v1459_v35 = vld [vmem:[%s2341_s29 + $0x8] sm:$0xf0]  ;;  %v1458_v36 = vor.u32 %v1653_v33, %v1457_v32  ;;  %v1465_v38 = vld [vmem:[%s2341_s29 + $0x10] sm:$0xf]  ;;  %v1655_v39 = vld [vmem:[%s2341_s29 + $0x14] sm:$0xf0] }
  0x51   : > { %v1462_v37 = vor.u32 %v1652_v34, %v1459_v35  ;;  %v1654_v40 = vld [vmem:[%s2341_s29 + $0x14] sm:$0xf]  ;;  %v1467_v41 = vld [vmem:[%s2341_s29 + $0x18] sm:$0xf0]  ;;  %v1466_v42 = vor.u32 %v1655_v39, %v1465_v38  ;;  %v1481_v50 = vld [vmem:[%s2341_s29 + $0x30] sm:$0xf] }
  0x52   : > { %v1470_v43 = vor.u32 %v1654_v40, %v1467_v41  ;;  %v1659_v51 = vld [vmem:[%s2341_s29 + $0x34] sm:$0xf0]  ;;  %v1658_v52 = vld [vmem:[%s2341_s29 + $0x34] sm:$0xf]  ;;  %v1483_v53 = vld [vmem:[%s2341_s29 + $0x38] sm:$0xf0] }
  0x53   : > { %v1482_v54 = vor.u32 %v1659_v51, %v1481_v50  ;;  %v1486_v55 = vor.u32 %v1658_v52, %v1483_v53  ;;  %v318_v62 = vld [vmem:[%s2341_s29] sm:$0xff]  ;;  %v319_v63 = vld [vmem:[%s2341_s29 + $0x8] sm:$0xff]  ;;  %v1662_v8 = vld [vmem:[%s2341_s29 + $0x54] sm:$0xf]  ;;  %s2594_s11 = scalar_lea.vmem [#allocation8], %s1452_s27  ;;  %s311_s6 = scalar_lea.vmem [#allocation9], %s2251_s19 }
  0x54   : > { %609 = vmatpush.bf16.xpose.msra.mxu0 %v1554_v44  ;;  %v1473_v44 = vld [vmem:[%s2341_s29 + $0x20] sm:$0xf]  ;;  %v1080_v0 = vunpack.c.l.bf16 %v318_v62  ;;  %v1081_v1 = vunpack.c.h.bf16 %v318_v62  ;;  %v1082_v2 = vunpack.c.l.bf16 %v319_v63  ;;  %v1083_v3 = vunpack.c.h.bf16 %v319_v63  ;;  %v1499_v9 = vld [vmem:[%s2341_s29 + $0x58] sm:$0xf0]  ;;  %v1665_v25 = vld [vmem:[%s2341_s29 + $0x64] sm:$0xf0] }
  0x55   : > { %658 = vmatpush.bf16.xpose.msra.mxu1 %v1558_v45  ;;  %v1657_v45 = vld [vmem:[%s2341_s29 + $0x24] sm:$0xf0]  ;;  %v1502_v11 = vor.u32 %v1662_v8, %v1499_v9  ;;  %v322_v12 = vld [vmem:[%s2341_s29 + $0x20] sm:$0xff]  ;;  %v1507_v27 = vld [vmem:[%s2341_s29 + $0x68] sm:$0xf0]  ;;  %p1647_p1 = scmp.ne.s32.totalorder %s2075_s23, 0 }
  0x56   : > { %707 = vmatpush.bf16.xpose.msra.mxu2 %v1618_v46  ;;  %756 = vmatpush.bf16.xpose.msra.mxu3 %v1622_v47  ;;  %v1656_v46 = vld [vmem:[%s2341_s29 + $0x24] sm:$0xf]  ;;  %v1475_v47 = vld [vmem:[%s2341_s29 + $0x28] sm:$0xf0]  ;;  %v1474_v48 = vor.u32 %v1657_v45, %v1473_v44  ;;  %v1088_v13 = vunpack.c.l.bf16 %v322_v12  ;;  %v1089_v14 = vunpack.c.h.bf16 %v322_v12  ;;  %v1505_v24 = vld [vmem:[%s2341_s29 + $0x60] sm:$0xf] }
  0x57   : > { %v1478_v49 = vor.u32 %v1656_v46, %v1475_v47  ;;  %v1664_v26 = vld [vmem:[%s2341_s29 + $0x64] sm:$0xf]  ;;  %v320_v38 = vld [vmem:[%s2341_s29 + $0x10] sm:$0xff]  ;;  %v327_v39 = vld [vmem:[%s2341_s29 + $0x48] sm:$0xff] }
  0x58   : > { %v1124_v15 = vadd.f32 %v1089_v14, %v1088_v13  ;;  %v1084_v40 = vunpack.c.l.bf16 %v320_v38  ;;  %v1085_v41 = vunpack.c.h.bf16 %v320_v38  ;;  %v1513_v46 = vld [vmem:[%s2341_s29 + $0x70] sm:$0xf]  ;;  %v1667_v47 = vld [vmem:[%s2341_s29 + $0x74] sm:$0xf0]  ;;  %v323_v52 = vld [vmem:[%s2341_s29 + $0x28] sm:$0xff] }
  0x59   : > { %v1514_v50 = vor.u32 %v1667_v47, %v1513_v46  ;;  %v330_v53 = vld [vmem:[%s2341_s29 + $0x60] sm:$0xff] }
  0x5a   : > { %v1118_v44 = vadd.f32 %v1085_v41, %v1084_v40 }
  0x5c   : > { %610 = vmatpush.bf16.xpose.msra.mxu0 %v1546_v56  ;;  %v1489_v56 = vld [vmem:[%s2341_s29 + $0x40] sm:$0xf]  ;;  %1119 = vadd.xlane.f32.xlu2 %v1118_v44 }
  0x5d   : > { %659 = vmatpush.bf16.xpose.msra.mxu1 %v1550_v57  ;;  %v1661_v57 = vld [vmem:[%s2341_s29 + $0x44] sm:$0xf0] }
  0x5e   : > { %708 = vmatpush.bf16.xpose.msra.mxu2 %v1610_v58  ;;  %757 = vmatpush.bf16.xpose.msra.mxu3 %v1614_v59  ;;  %v1660_v58 = vld [vmem:[%s2341_s29 + $0x44] sm:$0xf]  ;;  %v1491_v59 = vld [vmem:[%s2341_s29 + $0x48] sm:$0xf0]  ;;  %v1490_v60 = vor.u32 %v1661_v57, %v1489_v56  ;;  %v1104_v56 = vunpack.c.l.bf16 %v330_v53  ;;  %v1105_v57 = vunpack.c.h.bf16 %v330_v53 }
  0x5f   : > { %v1494_v61 = vor.u32 %v1660_v58, %v1491_v59 }
  0x60   : > { %v1148_v59 = vadd.f32 %v1105_v57, %v1104_v56 }
  0x64   : > { %611 = vmatpush.bf16.xpose.msra.mxu0 %v1538_v4  ;;  %v1112_v4 = vadd.f32 %v1081_v1, %v1080_v0  ;;  %v329_v1 = vld [vmem:[%s2341_s29 + $0x58] sm:$0xff] }
  0x65   : > { %660 = vmatpush.bf16.xpose.msra.mxu1 %v1542_v5  ;;  %v1115_v5 = vadd.f32 %v1083_v3, %v1082_v2  ;;  %v1102_v3 = vunpack.c.l.bf16 %v329_v1 }
  0x66   : > { %709 = vmatpush.bf16.xpose.msra.mxu2 %v1602_v6  ;;  %758 = vmatpush.bf16.xpose.msra.mxu3 %v1606_v7  ;;  %v1497_v6 = vld [vmem:[%s2341_s29 + $0x50] sm:$0xf]  ;;  %v1663_v7 = vld [vmem:[%s2341_s29 + $0x54] sm:$0xf0] }
  0x67   : > { %1113 = vadd.xlane.f32.xlu0 %v1112_v4  ;;  %1116 = vadd.xlane.f32.xlu1 %v1115_v5  ;;  %v1498_v10 = vor.u32 %v1663_v7, %v1497_v6  ;;  %v1103_v4 = vunpack.c.h.bf16 %v329_v1 }
  0x69   : > { %v1145_v5 = vadd.f32 %v1103_v4, %v1102_v3 }
  0x6c   : > { %612 = vmatpush.bf16.xpose.msra.mxu0 %v1530_v16  ;;  %v321_v16 = vld [vmem:[%s2341_s29 + $0x18] sm:$0xff] }
  0x6d   : > { %661 = vmatpush.bf16.xpose.msra.mxu1 %v1534_v17  ;;  %v325_v17 = vld [vmem:[%s2341_s29 + $0x38] sm:$0xff] }
  0x6e   : > { %710 = vmatpush.bf16.xpose.msra.mxu2 %v1594_v18  ;;  %759 = vmatpush.bf16.xpose.msra.mxu3 %v1598_v19  ;;  %v1086_v18 = vunpack.c.l.bf16 %v321_v16  ;;  %v1087_v19 = vunpack.c.h.bf16 %v321_v16  ;;  %v1094_v20 = vunpack.c.l.bf16 %v325_v17  ;;  %v1095_v21 = vunpack.c.h.bf16 %v325_v17 }
  0x6f   : > { %1125 = vadd.xlane.f32.xlu0 %v1124_v15 }
  0x70   : > { %v1121_v22 = vadd.f32 %v1087_v19, %v1086_v18  ;;  %v1133_v23 = vadd.f32 %v1095_v21, %v1094_v20 }
  0x72   : > { %1122 = vadd.xlane.f32.xlu1 %v1121_v22 }
  0x74   : > { %613 = vmatpush.bf16.xpose.msra.mxu0 %v1522_v28  ;;  %v1506_v28 = vor.u32 %v1665_v25, %v1505_v24 }
  0x75   : > { %662 = vmatpush.bf16.xpose.msra.mxu1 %v1526_v29  ;;  %v1510_v29 = vor.u32 %v1664_v26, %v1507_v27 }
  0x76   : > { %711 = vmatpush.bf16.xpose.msra.mxu2 %v1586_v30  ;;  %760 = vmatpush.bf16.xpose.msra.mxu3 %v1590_v31  ;;  %v324_v30 = vld [vmem:[%s2341_s29 + $0x30] sm:$0xff] }
  0x77   : > { %1134 = vadd.xlane.f32.xlu0 %v1133_v23  ;;  %v328_v31 = vld [vmem:[%s2341_s29 + $0x50] sm:$0xff]  ;;  %v1092_v32 = vunpack.c.l.bf16 %v324_v30  ;;  %v1093_v33 = vunpack.c.h.bf16 %v324_v30 }
  0x78   : > { %v1100_v34 = vunpack.c.l.bf16 %v328_v31  ;;  %v1101_v35 = vunpack.c.h.bf16 %v328_v31 }
  0x7b   : > { %614 = vmatmul.bf16.vlgmr.msra.gmra.mxu0 %v1458_v36 }
  0x7c   : > { %663 = vmatmul.bf16.vlgmr.msra.gmra.mxu1 %v1462_v37 }
  0x7d   : > { %712 = vmatmul.bf16.vlgmr.msra.gmra.mxu2 %v1458_v36  ;;  %761 = vmatmul.bf16.vlgmr.msra.gmra.mxu3 %v1462_v37  ;;  %v1130_v36 = vadd.f32 %v1093_v33, %v1092_v32  ;;  %v1142_v37 = vadd.f32 %v1101_v35, %v1100_v34 }
  0x7f   : > { %1131 = vadd.xlane.f32.xlu1 %v1130_v36  ;;  %1143 = vadd.xlane.f32.xlu0 %v1142_v37 }
  0x8b   : > { %619 = vmatmul.bf16.gmra.mxu0 %v1466_v42 }
  0x8c   : > { %668 = vmatmul.bf16.gmra.mxu1 %v1470_v43 }
  0x8d   : > { %717 = vmatmul.bf16.gmra.mxu2 %v1466_v42  ;;  %766 = vmatmul.bf16.gmra.mxu3 %v1470_v43  ;;  %v1098_v42 = vunpack.c.l.bf16 %v327_v39  ;;  %v1099_v43 = vunpack.c.h.bf16 %v327_v39 }
  0x8f   : > { %v1139_v45 = vadd.f32 %v1099_v43, %v1098_v42 }
  0x91   : > { %1140 = vadd.xlane.f32.xlu1 %v1139_v45 }
  0x99   : > { %1149 = vadd.xlane.f32.xlu1 %v1148_v59 }
  0x9b   : > { %624 = vmatmul.bf16.gmra.mxu0 %v1474_v48 }
  0x9c   : > { %673 = vmatmul.bf16.gmra.mxu1 %v1478_v49 }
  0x9d   : > { %722 = vmatmul.bf16.gmra.mxu2 %v1474_v48  ;;  %771 = vmatmul.bf16.gmra.mxu3 %v1478_v49  ;;  %v1666_v48 = vld [vmem:[%s2341_s29 + $0x74] sm:$0xf]  ;;  %v1515_v49 = vld [vmem:[%s2341_s29 + $0x78] sm:$0xf0] }
  0x9e   : > { %v1518_v51 = vor.u32 %v1666_v48, %v1515_v49 }
  0xab   : > { %629 = vmatmul.bf16.gmra.mxu0 %v1482_v54 }
  0xac   : > { %678 = vmatmul.bf16.gmra.mxu1 %v1486_v55 }
  0xad   : > { %727 = vmatmul.bf16.gmra.mxu2 %v1482_v54  ;;  %776 = vmatmul.bf16.gmra.mxu3 %v1486_v55  ;;  %v1090_v54 = vunpack.c.l.bf16 %v323_v52  ;;  %v1091_v55 = vunpack.c.h.bf16 %v323_v52 }
  0xaf   : > { %v1127_v58 = vadd.f32 %v1091_v55, %v1090_v54 }
  0xb1   : > { %1128 = vadd.xlane.f32.xlu2 %v1127_v58 }
  0xbb   : > { %634 = vmatmul.bf16.gmra.mxu0 %v1490_v60 }
  0xbc   : > { %683 = vmatmul.bf16.gmra.mxu1 %v1494_v61 }
  0xbd   : > { %732 = vmatmul.bf16.gmra.mxu2 %v1490_v60  ;;  %781 = vmatmul.bf16.gmra.mxu3 %v1494_v61  ;;  %v326_v60 = vld [vmem:[%s2341_s29 + $0x40] sm:$0xff] }
  0xbe   : > { %v1096_v61 = vunpack.c.l.bf16 %v326_v60  ;;  %v1097_v62 = vunpack.c.h.bf16 %v326_v60 }
  0xc0   : > { %v1136_v63 = vadd.f32 %v1097_v62, %v1096_v61 }
  0xc2   : > { %1137 = vadd.xlane.f32.xlu2 %v1136_v63 }
  0xca   : > { %1146 = vadd.xlane.f32.xlu2 %v1145_v5 }
  0xcb   : > { %639 = vmatmul.bf16.gmra.mxu0 %v1498_v10 }
  0xcc   : > { %688 = vmatmul.bf16.gmra.mxu1 %v1502_v11 }
  0xcd   : > { %737 = vmatmul.bf16.gmra.mxu2 %v1498_v10  ;;  %786 = vmatmul.bf16.gmra.mxu3 %v1502_v11 }
  0xdb   : > { %644 = vmatmul.bf16.gmra.mxu0 %v1506_v28 }
  0xdc   : > { %693 = vmatmul.bf16.gmra.mxu1 %v1510_v29 }
  0xdd   : > { %742 = vmatmul.bf16.gmra.mxu2 %v1506_v28  ;;  %791 = vmatmul.bf16.gmra.mxu3 %v1510_v29 }
  0xeb   : > { %649 = vmatmul.bf16.gmra.mxu0 %v1514_v50 }
  0xec   : > { %698 = vmatmul.bf16.gmra.mxu1 %v1518_v51 }
  0xed   : > { %747 = vmatmul.bf16.gmra.mxu2 %v1514_v50  ;;  %796 = vmatmul.bf16.gmra.mxu3 %v1518_v51 }
  0xf8   : > { %v615_v0 = vpop.f32.mrf.mxu0 }
  0xf9   : > { %v664_v2 = vpop.f32.mrf.mxu1 }
  0xfa   : > { %v2388_v6 = vadd.f32 %v664_v2, %v615_v0 }
 0x100   : > { %v713_v7 = vpop.f32.mrf.mxu2  ;;  %v762_v8 = vpop.f32.mrf.mxu3 }
 0x101   : > { %v617_v9 = vpop.f32.mrf.mxu0  ;;  %v2390_v10 = vadd.f32 %v762_v8, %v713_v7  ;;  %v666_v11 = vpop.f32.mrf.mxu1 }
 0x102   : > { %v2394_v16 = vadd.f32 %v666_v11, %v617_v9 }
 0x103   : > { %v802_v12 = vmax.f32 %v2388_v6, %v2390_v10 }
 0x105   : > { %803 = vmax.xlane.f32.xlu0 %v802_v12 }
 0x108   : > { %v715_v13 = vpop.f32.mrf.mxu2  ;;  %v764_v14 = vpop.f32.mrf.mxu3 }
 0x109   : > { %v620_v15 = vpop.f32.mrf.mxu0  ;;  %v2396_v17 = vadd.f32 %v764_v14, %v715_v13  ;;  %v669_v18 = vpop.f32.mrf.mxu1 }
 0x10a   : > { %v2400_v20 = vadd.f32 %v669_v18, %v620_v15  ;;  %v2450_v18 = vpop.xlane.xlu0 %1113 }
 0x10b   : > { %v805_v19 = vmax.f32 %v2394_v16, %v2396_v17 }
 0x10d   : > { %806 = vmax.xlane.f32.xlu0 %v805_v19 }
 0x110   : > { %v718_v21 = vpop.f32.mrf.mxu2  ;;  %v767_v22 = vpop.f32.mrf.mxu3 }
 0x111   : > { %v622_v23 = vpop.f32.mrf.mxu0  ;;  %v2402_v24 = vadd.f32 %v767_v22, %v718_v21  ;;  %v671_v25 = vpop.f32.mrf.mxu1 }
 0x112   : > { %v2406_v30 = vadd.f32 %v671_v25, %v622_v23 }
 0x113   : > { %v808_v26 = vmax.f32 %v2400_v20, %v2402_v24 }
 0x115   : > { %809 = vmax.xlane.f32.xlu1 %v808_v26  ;;  %v2456_v26 = vpop.xlane.xlu1 %1116 }
 0x118   : > { %v720_v27 = vpop.f32.mrf.mxu2  ;;  %v769_v28 = vpop.f32.mrf.mxu3 }
 0x119   : > { %v625_v29 = vpop.f32.mrf.mxu0  ;;  %v2408_v31 = vadd.f32 %v769_v28, %v720_v27  ;;  %v674_v32 = vpop.f32.mrf.mxu1 }
 0x11a   : > { %v2412_v34 = vadd.f32 %v674_v32, %v625_v29 }
 0x11b   : > { %v811_v33 = vmax.f32 %v2406_v30, %v2408_v31 }
 0x11d   : > { %812 = vmax.xlane.f32.xlu1 %v811_v33 }
 0x120   : > { %v723_v35 = vpop.f32.mrf.mxu2  ;;  %v772_v36 = vpop.f32.mrf.mxu3 }
 0x121   : > { %v627_v37 = vpop.f32.mrf.mxu0  ;;  %v2414_v38 = vadd.f32 %v772_v36, %v723_v35  ;;  %v676_v39 = vpop.f32.mrf.mxu1 }
 0x122   : > { %v2418_v44 = vadd.f32 %v676_v39, %v627_v37  ;;  %v2462_v36 = vpop.xlane.xlu0 %1125 }
 0x123   : > { %v814_v40 = vmax.f32 %v2412_v34, %v2414_v38 }
 0x125   : > { %815 = vmax.xlane.f32.xlu2 %v814_v40 }
 0x128   : > { %v725_v41 = vpop.f32.mrf.mxu2  ;;  %v774_v42 = vpop.f32.mrf.mxu3 }
 0x129   : > { %v630_v43 = vpop.f32.mrf.mxu0  ;;  %v2420_v45 = vadd.f32 %v774_v42, %v725_v41  ;;  %v679_v46 = vpop.f32.mrf.mxu1 }
 0x12a   : > { %v2424_v48 = vadd.f32 %v679_v46, %v630_v43  ;;  %v2468_v42 = vpop.xlane.xlu1 %1122 }
 0x12b   : > { %v817_v47 = vmax.f32 %v2418_v44, %v2420_v45 }
 0x12d   : > { %818 = vmax.xlane.f32.xlu2 %v817_v47 }
 0x130   : > { %v728_v49 = vpop.f32.mrf.mxu2  ;;  %v777_v50 = vpop.f32.mrf.mxu3 }
 0x131   : > { %v632_v51 = vpop.f32.mrf.mxu0  ;;  %v2426_v52 = vadd.f32 %v777_v50, %v728_v49  ;;  %v681_v53 = vpop.f32.mrf.mxu1 }
 0x132   : > { %v2430_v58 = vadd.f32 %v681_v53, %v632_v51  ;;  %v2474_v50 = vpop.xlane.xlu0 %1134 }
 0x133   : > { %v820_v54 = vmax.f32 %v2424_v48, %v2426_v52 }
 0x135   : > { %821 = vmax.xlane.f32.xlu0 %v820_v54 }
 0x138   : > { %v730_v55 = vpop.f32.mrf.mxu2  ;;  %v779_v56 = vpop.f32.mrf.mxu3 }
 0x139   : > { %v635_v57 = vpop.f32.mrf.mxu0  ;;  %v2432_v59 = vadd.f32 %v779_v56, %v730_v55  ;;  %v684_v60 = vpop.f32.mrf.mxu1 }
 0x13a   : > { %v2436_v62 = vadd.f32 %v684_v60, %v635_v57  ;;  %v2480_v56 = vpop.xlane.xlu1 %1131 }
 0x13b   : > { %v823_v61 = vmax.f32 %v2430_v58, %v2432_v59 }
 0x13d   : > { %824 = vmax.xlane.f32.xlu1 %v823_v61 }
 0x140   : > { %v733_v63 = vpop.f32.mrf.mxu2  ;;  %v782_v0 = vpop.f32.mrf.mxu3 }
 0x141   : > { %v637_v1 = vpop.f32.mrf.mxu0  ;;  %v2438_v2 = vadd.f32 %v782_v0, %v733_v63  ;;  %v686_v3 = vpop.f32.mrf.mxu1 }
 0x142   : > { %v2442_v9 = vadd.f32 %v686_v3, %v637_v1  ;;  %v2484_v63 = vpop.xlane.xlu0 %1143 }
 0x143   : > { %v826_v4 = vmax.f32 %v2436_v62, %v2438_v2 }
 0x145   : > { %827 = vmax.xlane.f32.xlu2 %v826_v4  ;;  %v2488_v4 = vpop.xlane.xlu2 %1119 }
 0x148   : > { %v735_v5 = vpop.f32.mrf.mxu2  ;;  %v784_v7 = vpop.f32.mrf.mxu3 }
 0x149   : > { %v640_v8 = vpop.f32.mrf.mxu0  ;;  %v2444_v11 = vadd.f32 %v784_v7, %v735_v5  ;;  %v689_v12 = vpop.f32.mrf.mxu1 }
 0x14a   : > { %v2448_v14 = vadd.f32 %v689_v12, %v640_v8  ;;  %v2494_v8 = vpop.xlane.xlu1 %1140 }
 0x14b   : > { %v829_v13 = vmax.f32 %v2442_v9, %v2444_v11 }
 0x14d   : > { %830 = vmax.xlane.f32.xlu0 %v829_v13 }
 0x150   : > { %v738_v15 = vpop.f32.mrf.mxu2  ;;  %v787_v19 = vpop.f32.mrf.mxu3 }
 0x151   : > { %v642_v21 = vpop.f32.mrf.mxu0  ;;  %v2452_v22 = vadd.f32 %v787_v19, %v738_v15  ;;  %v691_v23 = vpop.f32.mrf.mxu1 }
 0x152   : > { %v2458_v32 = vadd.f32 %v691_v23, %v642_v21 }
 0x153   : > { %v832_v25 = vmax.f32 %v2448_v14, %v2452_v22 }
 0x155   : > { %833 = vmax.xlane.f32.xlu1 %v832_v25 }
 0x158   : > { %v740_v27 = vpop.f32.mrf.mxu2  ;;  %v789_v28 = vpop.f32.mrf.mxu3 }
 0x159   : > { %v645_v29 = vpop.f32.mrf.mxu0  ;;  %v2460_v33 = vadd.f32 %v789_v28, %v740_v27  ;;  %v694_v35 = vpop.f32.mrf.mxu1 }
 0x15a   : > { %v2466_v39 = vadd.f32 %v694_v35, %v645_v29  ;;  %v2502_v29 = vpop.xlane.xlu2 %1128 }
 0x15b   : > { %v835_v37 = vmax.f32 %v2458_v32, %v2460_v33 }
 0x15d   : > { %836 = vmax.xlane.f32.xlu2 %v835_v37 }
 0x160   : > { %v743_v40 = vpop.f32.mrf.mxu2  ;;  %v792_v41 = vpop.f32.mrf.mxu3 }
 0x161   : > { %v2470_v43 = vadd.f32 %v792_v41, %v743_v40  ;;  %v647_v46 = vpop.f32.mrf.mxu0  ;;  %v696_v47 = vpop.f32.mrf.mxu1  ;;  %v994_v41 = vld [vmem:[%s2263_s15] sm:$0x3] }
 0x162   : > { %v2476_v54 = vadd.f32 %v696_v47, %v647_v46  ;;  %v2507_v46 = vpop.xlane.xlu1 %1149 }
 0x163   : > { %v838_v49 = vmax.f32 %v2466_v39, %v2470_v43 }
 0x165   : > { %839 = vmax.xlane.f32.xlu0 %v838_v49  ;;  %v2509_v49 = vperm.slane %v994_v41, 0 }
 0x168   : > { %v745_v51 = vpop.f32.mrf.mxu2  ;;  %v794_v53 = vpop.f32.mrf.mxu3 }
 0x169   : > { %v2478_v55 = vadd.f32 %v794_v53, %v745_v51  ;;  %v650_v60 = vpop.f32.mrf.mxu0  ;;  %v699_v61 = vpop.f32.mrf.mxu1  ;;  %v2513_v51 = vperm.slane %v994_v41, 1 }
 0x16a   : > { %v2486_v0 = vadd.f32 %v699_v61, %v650_v60 }
 0x16b   : > { %v841_v57 = vmax.f32 %v2476_v54, %v2478_v55 }
 0x16d   : > { %842 = vmax.xlane.f32.xlu1 %v841_v57 }
 0x170   : > { %v748_v1 = vpop.f32.mrf.mxu2  ;;  %v797_v3 = vpop.f32.mrf.mxu3 }
 0x171   : > { %v2490_v5 = vadd.f32 %v797_v3, %v748_v1  ;;  %v652_v12 = vpop.f32.mrf.mxu0  ;;  %v701_v13 = vpop.f32.mrf.mxu1 }
 0x172   : > { %v2496_v23 = vadd.f32 %v701_v13, %v652_v12  ;;  %v2515_v1 = vpop.xlane.xlu2 %1137 }
 0x173   : > { %v844_v7 = vmax.f32 %v2486_v0, %v2490_v5 }
 0x175   : > { %845 = vmax.xlane.f32.xlu2 %v844_v7 }
 0x178   : > { %v750_v15 = vpop.f32.mrf.mxu2  ;;  %v799_v19 = vpop.f32.mrf.mxu3 }
 0x179   : > { %v804_v21 = vpop.xlane.xlu0 %803  ;;  %v2498_v25 = vadd.f32 %v799_v19, %v750_v15 }
 0x17a   : > { %v850_v27 = vsub.f32 %v2388_v6, %v804_v21  ;;  %v851_v28 = vsub.f32 %v2390_v10, %v804_v21 }
 0x17b   : > { %v847_v40 = vmax.f32 %v2496_v23, %v2498_v25 }
 0x17c   : > { %v882_v35 = vmul.f32 1.442695, %v850_v27  ;;  %v884_v37 = vmul.f32 1.442695, %v851_v28 }
 0x17d   : > { %848 = vmax.xlane.f32.xlu0 %v847_v40  ;;  %v2523_v40 = vpop.xlane.xlu2 %1146 }
 0x17e   : > { %1797 = vpow2.f32 %v882_v35 }
 0x17f   : > { %1799 = vpow2.f32 %v884_v37 }
 0x181   : > { %v807_v47 = vpop.xlane.xlu0 %806 }
 0x182   : > { %v852_v6 = vsub.f32 %v2394_v16, %v807_v47  ;;  %v853_v10 = vsub.f32 %v2396_v17, %v807_v47 }
 0x184   : > { %v1798_v53 = vpop.eup %1797  ;;  %v886_v57 = vmul.f32 1.442695, %v852_v6  ;;  %v888_v60 = vmul.f32 1.442695, %v853_v10 }
 0x185   : > { %v1800_v61 = vpop.eup %1799  ;;  %v1000_v3 = vmul.f32 %v1798_v53, %v2509_v49 }
 0x186   : > { %1801 = vpow2.f32 %v886_v57  ;;  %v946_v7 = vadd.f32 %v1800_v61, %v1798_v53  ;;  %v1001_v12 = vmul.f32 %v1800_v61, %v2513_v51 }
 0x187   : > { %1803 = vpow2.f32 %v888_v60 }
 0x188   : > { %947 = vadd.xlane.f32.xlu1 %v946_v7  ;;  %v1032_v13 = vadd.f32 %v1001_v12, %v1000_v3  ;;  %v810_v16 = vpop.xlane.xlu1 %809 }
 0x189   : > { %v854_v17 = vsub.f32 %v2400_v20, %v810_v16  ;;  %v855_v15 = vsub.f32 %v2402_v24, %v810_v16 }
 0x18a   : > { %1033 = vadd.xlane.f32.xlu2 %v1032_v13 }
 0x18b   : > { %v890_v21 = vmul.f32 1.442695, %v854_v17  ;;  %v892_v27 = vmul.f32 1.442695, %v855_v15 }
 0x18c   : > { %v1802_v19 = vpop.eup %1801 }
 0x18d   : > { %v1804_v28 = vpop.eup %1803  ;;  %v1002_v35 = vmul.f32 %v1802_v19, %v2509_v49  ;;  %1805 = vpow2.f32 %v890_v21 }
 0x18e   : > { %v1003_v37 = vmul.f32 %v1804_v28, %v2513_v51  ;;  %1807 = vpow2.f32 %v892_v27  ;;  %v949_v47 = vadd.f32 %v1804_v28, %v1802_v19 }
 0x190   : > { %v1035_v41 = vadd.f32 %v1003_v37, %v1002_v35  ;;  %v813_v6 = vpop.xlane.xlu1 %812 }
 0x191   : > { %v856_v20 = vsub.f32 %v2406_v30, %v813_v6  ;;  %v857_v24 = vsub.f32 %v2408_v31, %v813_v6 }
 0x192   : > { %1036 = vadd.xlane.f32.xlu0 %v1035_v41  ;;  %950 = vadd.xlane.f32.xlu2 %v949_v47 }
 0x193   : > { %v1806_v10 = vpop.eup %1805  ;;  %v894_v53 = vmul.f32 1.442695, %v856_v20  ;;  %v896_v57 = vmul.f32 1.442695, %v857_v24 }
 0x194   : > { %v1808_v60 = vpop.eup %1807  ;;  %v1004_v61 = vmul.f32 %v1806_v10, %v2509_v49 }
 0x195   : > { %1809 = vpow2.f32 %v894_v53  ;;  %v1005_v3 = vmul.f32 %v1808_v60, %v2513_v51  ;;  %v952_v12 = vadd.f32 %v1808_v60, %v1806_v10 }
 0x196   : > { %1811 = vpow2.f32 %v896_v57 }
 0x197   : > { %v1038_v7 = vadd.f32 %v1005_v3, %v1004_v61 }
 0x198   : > { %v816_v13 = vpop.xlane.xlu2 %815 }
 0x199   : > { %v858_v16 = vsub.f32 %v2412_v34, %v816_v13  ;;  %v859_v30 = vsub.f32 %v2414_v38, %v816_v13  ;;  %1039 = vadd.xlane.f32.xlu1 %v1038_v7 }
 0x19a   : > { %953 = vadd.xlane.f32.xlu0 %v952_v12 }
 0x19b   : > { %v1810_v31 = vpop.eup %1809  ;;  %v898_v17 = vmul.f32 1.442695, %v858_v16  ;;  %v900_v15 = vmul.f32 1.442695, %v859_v30 }
 0x19c   : > { %v1812_v19 = vpop.eup %1811  ;;  %v1006_v21 = vmul.f32 %v1810_v31, %v2509_v49 }
 0x19d   : > { %1813 = vpow2.f32 %v898_v17  ;;  %v1007_v27 = vmul.f32 %v1812_v19, %v2513_v51  ;;  %v955_v28 = vadd.f32 %v1812_v19, %v1810_v31 }
 0x19e   : > { %1815 = vpow2.f32 %v900_v15 }
 0x19f   : > { %v1041_v35 = vadd.f32 %v1007_v27, %v1006_v21 }
 0x1a0   : > { %v819_v37 = vpop.xlane.xlu2 %818 }
 0x1a1   : > { %v860_v41 = vsub.f32 %v2418_v44, %v819_v37  ;;  %v861_v34 = vsub.f32 %v2420_v45, %v819_v37  ;;  %956 = vadd.xlane.f32.xlu1 %v955_v28  ;;  %1042 = vadd.xlane.f32.xlu2 %v1041_v35 }
 0x1a3   : > { %v1814_v38 = vpop.eup %1813  ;;  %v902_v47 = vmul.f32 1.442695, %v860_v41  ;;  %v904_v6 = vmul.f32 1.442695, %v861_v34 }
 0x1a4   : > { %v1816_v20 = vpop.eup %1815  ;;  %v1008_v24 = vmul.f32 %v1814_v38, %v2509_v49 }
 0x1a5   : > { %1817 = vpow2.f32 %v902_v47  ;;  %v1009_v10 = vmul.f32 %v1816_v20, %v2513_v51  ;;  %v958_v57 = vadd.f32 %v1816_v20, %v1814_v38 }
 0x1a6   : > { %1819 = vpow2.f32 %v904_v6 }
 0x1a7   : > { %v1044_v53 = vadd.f32 %v1009_v10, %v1008_v24 }
 0x1a8   : > { %v822_v60 = vpop.xlane.xlu0 %821 }
 0x1a9   : > { %1045 = vadd.xlane.f32.xlu0 %v1044_v53  ;;  %959 = vadd.xlane.f32.xlu2 %v958_v57  ;;  %v862_v44 = vsub.f32 %v2424_v48, %v822_v60  ;;  %v863_v45 = vsub.f32 %v2426_v52, %v822_v60 }
 0x1ab   : > { %v1818_v61 = vpop.eup %1817  ;;  %v906_v3 = vmul.f32 1.442695, %v862_v44  ;;  %v908_v7 = vmul.f32 1.442695, %v863_v45 }
 0x1ac   : > { %v1820_v12 = vpop.eup %1819  ;;  %v1010_v13 = vmul.f32 %v1818_v61, %v2509_v49 }
 0x1ad   : > { %1821 = vpow2.f32 %v906_v3  ;;  %v1011_v16 = vmul.f32 %v1820_v12, %v2513_v51  ;;  %v961_v30 = vadd.f32 %v1820_v12, %v1818_v61 }
 0x1ae   : > { %1823 = vpow2.f32 %v908_v7 }
 0x1af   : > { %v1047_v31 = vadd.f32 %v1011_v16, %v1010_v13 }
 0x1b0   : > { %v825_v17 = vpop.xlane.xlu1 %824 }
 0x1b1   : > { %v864_v15 = vsub.f32 %v2430_v58, %v825_v17  ;;  %v865_v19 = vsub.f32 %v2432_v59, %v825_v17  ;;  %962 = vadd.xlane.f32.xlu0 %v961_v30  ;;  %1048 = vadd.xlane.f32.xlu2 %v1047_v31 }
 0x1b3   : > { %v1822_v48 = vpop.eup %1821  ;;  %v910_v52 = vmul.f32 1.442695, %v864_v15  ;;  %v912_v21 = vmul.f32 1.442695, %v865_v19 }
 0x1b4   : > { %v1824_v27 = vpop.eup %1823  ;;  %v1012_v34 = vmul.f32 %v1822_v48, %v2509_v49 }
 0x1b5   : > { %1825 = vpow2.f32 %v910_v52  ;;  %v964_v28 = vadd.f32 %v1824_v27, %v1822_v48  ;;  %v1013_v58 = vmul.f32 %v1824_v27, %v2513_v51 }
 0x1b6   : > { %1827 = vpow2.f32 %v912_v21 }
 0x1b7   : > { %965 = vadd.xlane.f32.xlu1 %v964_v28  ;;  %v1050_v10 = vadd.f32 %v1013_v58, %v1012_v34 }
 0x1b8   : > { %v828_v35 = vpop.xlane.xlu2 %827 }
 0x1b9   : > { %v866_v37 = vsub.f32 %v2436_v62, %v828_v35  ;;  %v867_v41 = vsub.f32 %v2438_v2, %v828_v35 }
 0x1bb   : > { %v1826_v59 = vpop.eup %1825  ;;  %v914_v38 = vmul.f32 1.442695, %v866_v37  ;;  %v916_v47 = vmul.f32 1.442695, %v867_v41 }
 0x1bc   : > { %v1828_v6 = vpop.eup %1827  ;;  %v1014_v20 = vmul.f32 %v1826_v59, %v2509_v49 }
 0x1bd   : > { %1829 = vpow2.f32 %v914_v38  ;;  %v967_v24 = vadd.f32 %v1828_v6, %v1826_v59  ;;  %v1015_v53 = vmul.f32 %v1828_v6, %v2513_v51 }
 0x1be   : > { %1831 = vpow2.f32 %v916_v47 }
 0x1bf   : > { %968 = vadd.xlane.f32.xlu2 %v967_v24  ;;  %1051 = vadd.xlane.f32.xlu1 %v1050_v10  ;;  %v1053_v62 = vadd.f32 %v1015_v53, %v1014_v20 }
 0x1c0   : > { %v831_v2 = vpop.xlane.xlu0 %830 }
 0x1c1   : > { %1054 = vadd.xlane.f32.xlu0 %v1053_v62  ;;  %v868_v57 = vsub.f32 %v2442_v9, %v831_v2  ;;  %v869_v60 = vsub.f32 %v2444_v11, %v831_v2 }
 0x1c3   : > { %v1830_v44 = vpop.eup %1829  ;;  %v918_v45 = vmul.f32 1.442695, %v868_v57  ;;  %v920_v61 = vmul.f32 1.442695, %v869_v60 }
 0x1c4   : > { %v1832_v3 = vpop.eup %1831  ;;  %v1016_v7 = vmul.f32 %v1830_v44, %v2509_v49 }
 0x1c5   : > { %1833 = vpow2.f32 %v918_v45  ;;  %v1017_v12 = vmul.f32 %v1832_v3, %v2513_v51  ;;  %v970_v13 = vadd.f32 %v1832_v3, %v1830_v44 }
 0x1c6   : > { %1835 = vpow2.f32 %v920_v61 }
 0x1c7   : > { %v1056_v16 = vadd.f32 %v1017_v12, %v1016_v7 }
 0x1c8   : > { %v834_v30 = vpop.xlane.xlu1 %833 }
 0x1c9   : > { %v870_v31 = vsub.f32 %v2448_v14, %v834_v30  ;;  %v871_v17 = vsub.f32 %v2452_v22, %v834_v30  ;;  %971 = vadd.xlane.f32.xlu0 %v970_v13  ;;  %1057 = vadd.xlane.f32.xlu2 %v1056_v16 }
 0x1cb   : > { %v1834_v9 = vpop.eup %1833  ;;  %v922_v11 = vmul.f32 1.442695, %v870_v31  ;;  %v924_v15 = vmul.f32 1.442695, %v871_v17 }
 0x1cc   : > { %v1836_v19 = vpop.eup %1835  ;;  %v1018_v28 = vmul.f32 %v1834_v9, %v2509_v49 }
 0x1cd   : > { %1837 = vpow2.f32 %v922_v11  ;;  %v973_v48 = vadd.f32 %v1836_v19, %v1834_v9  ;;  %v1019_v14 = vmul.f32 %v1836_v19, %v2513_v51 }
 0x1ce   : > { %1839 = vpow2.f32 %v924_v15  ;;  %v2096_v15 = vmov 256.0  }
 0x1cf   : > { %974 = vadd.xlane.f32.xlu1 %v973_v48  ;;  %v1059_v59 = vadd.f32 %v1019_v14, %v1018_v28 }
 0x1d0   : > { %v837_v52 = vpop.xlane.xlu2 %836 }
 0x1d1   : > { %v872_v21 = vsub.f32 %v2458_v32, %v837_v52  ;;  %v873_v27 = vsub.f32 %v2460_v33, %v837_v52 }
 0x1d3   : > { %v1838_v22 = vpop.eup %1837  ;;  %v926_v35 = vmul.f32 1.442695, %v872_v21  ;;  %v928_v37 = vmul.f32 1.442695, %v873_v27 }
 0x1d4   : > { %v1840_v41 = vpop.eup %1839  ;;  %v1020_v34 = vmul.f32 %v1838_v22, %v2509_v49 }
 0x1d5   : > { %1841 = vpow2.f32 %v926_v35  ;;  %v976_v58 = vadd.f32 %v1840_v41, %v1838_v22  ;;  %v1021_v38 = vmul.f32 %v1840_v41, %v2513_v51 }
 0x1d6   : > { %1843 = vpow2.f32 %v928_v37 }
 0x1d7   : > { %977 = vadd.xlane.f32.xlu2 %v976_v58  ;;  %1060 = vadd.xlane.f32.xlu1 %v1059_v59  ;;  %v1062_v32 = vadd.f32 %v1021_v38, %v1020_v34  ;;  %v331_v59 = vld [vmem:[%s2341_s29 + $0x68] sm:$0xff]  ;;  %v332_v38 = vld [vmem:[%s2341_s29 + $0x70] sm:$0xff] }
 0x1d8   : > { %v840_v33 = vpop.xlane.xlu0 %839 }
 0x1d9   : > { %1063 = vadd.xlane.f32.xlu0 %v1062_v32  ;;  %v874_v47 = vsub.f32 %v2466_v39, %v840_v33  ;;  %v875_v6 = vsub.f32 %v2470_v43, %v840_v33 }
 0x1db   : > { %v1842_v20 = vpop.eup %1841  ;;  %v930_v24 = vmul.f32 1.442695, %v874_v47  ;;  %v932_v10 = vmul.f32 1.442695, %v875_v6  ;;  %v1108_v6 = vunpack.c.l.bf16 %v332_v38 }
 0x1dc   : > { %v1844_v53 = vpop.eup %1843  ;;  %v1022_v62 = vmul.f32 %v1842_v20, %v2509_v49 }
 0x1dd   : > { %1845 = vpow2.f32 %v930_v24  ;;  %v1023_v2 = vmul.f32 %v1844_v53, %v2513_v51  ;;  %v979_v57 = vadd.f32 %v1844_v53, %v1842_v20  ;;  %v1109_v20 = vunpack.c.h.bf16 %v332_v38 }
 0x1de   : > { %1847 = vpow2.f32 %v932_v10 }
 0x1df   : > { %v1065_v60 = vadd.f32 %v1023_v2, %v1022_v62 }
 0x1e0   : > { %v843_v44 = vpop.xlane.xlu1 %842 }
 0x1e1   : > { %v876_v45 = vsub.f32 %v2476_v54, %v843_v44  ;;  %v877_v61 = vsub.f32 %v2478_v55, %v843_v44  ;;  %980 = vadd.xlane.f32.xlu0 %v979_v57  ;;  %1066 = vadd.xlane.f32.xlu2 %v1065_v60  ;;  %v1154_v44 = vadd.f32 %v1109_v20, %v1108_v6 }
 0x1e3   : > { %v1846_v39 = vpop.eup %1845  ;;  %v934_v43 = vmul.f32 1.442695, %v876_v45  ;;  %v936_v3 = vmul.f32 1.442695, %v877_v61  ;;  %v333_v45 = vld [vmem:[%s2341_s29 + $0x78] sm:$0xff] }
 0x1e4   : > { %v1848_v7 = vpop.eup %1847  ;;  %v1024_v31 = vmul.f32 %v1846_v39, %v2509_v49 }
 0x1e5   : > { %1849 = vpow2.f32 %v934_v43  ;;  %v982_v12 = vadd.f32 %v1848_v7, %v1846_v39  ;;  %v1025_v54 = vmul.f32 %v1848_v7, %v2513_v51  ;;  %v1111_v7 = vunpack.c.h.bf16 %v333_v45 }
 0x1e6   : > { %1851 = vpow2.f32 %v936_v3  ;;  %v1110_v3 = vunpack.c.l.bf16 %v333_v45 }
 0x1e7   : > { %983 = vadd.xlane.f32.xlu1 %v982_v12  ;;  %1853 = vrcp.f32 %v2096_v15  ;;  %v1068_v52 = vadd.f32 %v1025_v54, %v1024_v31 }
 0x1e8   : > { %v846_v13 = vpop.xlane.xlu2 %845 }
 0x1e9   : > { %v878_v16 = vsub.f32 %v2486_v0, %v846_v13  ;;  %v879_v30 = vsub.f32 %v2490_v5, %v846_v13  ;;  %v2582_v13 = vstv %s1183_s17 }
 0x1eb   : > { %v1850_v55 = vpop.eup %1849  ;;  %v938_v17 = vmul.f32 1.442695, %v878_v16  ;;  %v940_v9 = vmul.f32 1.442695, %v879_v30 }
 0x1ec   : > { %v1852_v11 = vpop.eup %1851  ;;  %v1026_v19 = vmul.f32 %v1850_v55, %v2509_v49 }
 0x1ed   : > { %1855 = vpow2.f32 %v938_v17  ;;  %v985_v48 = vadd.f32 %v1852_v11, %v1850_v55  ;;  %v1027_v21 = vmul.f32 %v1852_v11, %v2513_v51  ;;  %v1854_v14 = vpop.eup %1853  ;;  %v1157_v55 = vadd.f32 %v1111_v7, %v1110_v3 }
 0x1ee   : > { %1857 = vpow2.f32 %v940_v9  ;;  %v1161_v32 = vmul.f32 256.0, %v1854_v14  ;;  %vm1165_vm0 = vweird.f32 %v1854_v14 }
 0x1ef   : > { %986 = vadd.xlane.f32.xlu2 %v985_v48  ;;  %1069 = vadd.xlane.f32.xlu1 %v1068_v52  ;;  %v1071_v0 = vadd.f32 %v1027_v21, %v1026_v19 }
 0x1f0   : > { %v849_v5 = vpop.xlane.xlu0 %848  ;;  %v1162_v10 = vsub.f32 1.0, %v1161_v32 }
 0x1f1   : > { %1072 = vadd.xlane.f32.xlu0 %v1071_v0  ;;  %v880_v27 = vsub.f32 %v2496_v23, %v849_v5  ;;  %v881_v28 = vsub.f32 %v2498_v25, %v849_v5  ;;  %v1106_v23 = vunpack.c.l.bf16 %v331_v59  ;;  %v1107_v25 = vunpack.c.h.bf16 %v331_v59  ;;  %v1250_v5 = vld [vmem:[%s2594_s11] sm:$0xff]  ;;  %v1252_v59 = vld [vmem:[%s2594_s11 + $0x10] sm:$0xff] }
 0x1f2   : > { %v1163_v61 = vmul.f32 %v1854_v14, %v1162_v10  ;;  %v1253_v10 = vld [vmem:[%s2594_s11 + $0x18] sm:$0xff] }
 0x1f3   : > { %v1856_v22 = vpop.eup %1855  ;;  %v942_v35 = vmul.f32 1.442695, %v880_v27  ;;  %v944_v37 = vmul.f32 1.442695, %v881_v28  ;;  %v1151_v60 = vadd.f32 %v1107_v25, %v1106_v23  ;;  %v1251_v27 = vld [vmem:[%s2594_s11 + $0x8] sm:$0xff] }
 0x1f4   : > { %v1858_v41 = vpop.eup %1857  ;;  %v1028_v34 = vmul.f32 %v1856_v22, %v2509_v49  ;;  %v1164_v12 = vadd.f32 %v1854_v14, %v1163_v61  ;;  %v1254_v61 = vld [vmem:[%s2594_s11 + $0x20] sm:$0xff] }
 0x1f5   : > { %1859 = vpow2.f32 %v942_v35  ;;  %v1029_v58 = vmul.f32 %v1858_v41, %v2513_v51  ;;  %v988_v33 = vadd.f32 %v1858_v41, %v1856_v22 }
 0x1f6   : > { %1861 = vpow2.f32 %v944_v37  ;;  %v2585_v9 = vsel %vm1165_vm0, %v1854_v14, %v1164_v12 }
 0x1f7   : > { %v1074_v47 = vadd.f32 %v1029_v58, %v1028_v34  ;;  %v1168_v19 = vmul.f32 %v2585_v9, %v2456_v26  ;;  %v1169_v37 = vmul.f32 %v2585_v9, %v2488_v4  ;;  %v1170_v25 = vmul.f32 %v2585_v9, %v2468_v42 }
 0x1f9   : > { %989 = vadd.xlane.f32.xlu0 %v988_v33  ;;  %1075 = vadd.xlane.f32.xlu2 %v1074_v47 }
 0x1fb   : > { %v1860_v24 = vpop.eup %1859  ;;  %v948_v62 = vpop.xlane.xlu1 %947 }
 0x1fc   : > { %v1862_v53 = vpop.eup %1861  ;;  %1863 = vrcp.f32 %v948_v62  ;;  %v1030_v39 = vmul.f32 %v1860_v24, %v2509_v49 }
 0x1fd   : > { %v1034_v2 = vpop.xlane.xlu2 %1033  ;;  %v991_v57 = vadd.f32 %v1862_v53, %v1860_v24  ;;  %v1031_v43 = vmul.f32 %v1862_v53, %v2513_v51  ;;  %v1167_v51 = vmul.f32 %v2585_v9, %v2450_v18 }
 0x1fe   : > { %v1201_v17 = vmul.f32 %v2582_v13, %v1034_v2 }
 0x1ff   : > { %992 = vadd.xlane.f32.xlu1 %v991_v57  ;;  %v1077_v54 = vadd.f32 %v1031_v43, %v1030_v39 }
 0x201   : > { %1152 = vadd.xlane.f32.xlu0 %v1151_v60  ;;  %1155 = vadd.xlane.f32.xlu2 %v1154_v44  ;;  %v1171_v60 = vmul.f32 %v2585_v9, %v2462_v36 }
 0x202   : > { %v1864_v31 = vpop.eup %1863 }
 0x203   : > { %v1217_v49 = vmul.f32 %v1864_v31, %v1201_v17 }
 0x205   : > { %v951_v16 = vpop.xlane.xlu2 %950  ;;  %v1037_v30 = vpop.xlane.xlu0 %1036  ;;  %v1233_v48 = vadd.f32 %v1217_v49, %v1167_v51 }
 0x206   : > { %1865 = vrcp.f32 %v951_v16  ;;  %v1202_v11 = vmul.f32 %v2582_v13, %v1037_v30  ;;  %v1172_v30 = vmul.f32 %v2585_v9, %v2502_v29 }
 0x207   : > { %1078 = vadd.xlane.f32.xlu1 %v1077_v54  ;;  %v1266_v28 = vmul.f32 %v1250_v5, %v1233_v48  ;;  %v1255_v54 = vld [vmem:[%s2594_s11 + $0x28] sm:$0xff]  ;;  %v1173_v48 = vmul.f32 %v2585_v9, %v2480_v56 }
 0x209   : > { %1158 = vadd.xlane.f32.xlu0 %v1157_v55 }
 0x20c   : > { %v1866_v15 = vpop.eup %1865  ;;  %v1040_v21 = vpop.xlane.xlu1 %1039 }
 0x20d   : > { %v1218_v52 = vmul.f32 %v1866_v15, %v1202_v11  ;;  %v954_v0 = vpop.xlane.xlu0 %953  ;;  %v1203_v35 = vmul.f32 %v2582_v13, %v1040_v21  ;;  %v1256_v21 = vld [vmem:[%s2594_s11 + $0x30] sm:$0xff] }
 0x20e   : > { %1867 = vrcp.f32 %v954_v0 }
 0x20f   : > { %v1234_v18 = vadd.f32 %v1218_v52, %v1168_v19 }
 0x211   : > { %v1267_v14 = vmul.f32 %v1251_v27, %v1234_v18  ;;  %v1174_v18 = vmul.f32 %v2585_v9, %v2474_v50 }
 0x213   : > { %v1282_v22 = vadd.f32 %v1267_v14, %v1266_v28 }
 0x214   : > { %v1868_v26 = vpop.eup %1867  ;;  %v957_v34 = vpop.xlane.xlu1 %956 }
 0x215   : > { %v1219_v41 = vmul.f32 %v1868_v26, %v1203_v35  ;;  %v1043_v58 = vpop.xlane.xlu2 %1042  ;;  %1869 = vrcp.f32 %v957_v34 }
 0x216   : > { %v1204_v33 = vmul.f32 %v2582_v13, %v1043_v58 }
 0x217   : > { %v1235_v38 = vadd.f32 %v1219_v41, %v1169_v37 }
 0x219   : > { %v1268_v32 = vmul.f32 %v1252_v59, %v1235_v38  ;;  %v1175_v38 = vmul.f32 %v2585_v9, %v2515_v1 }
 0x21b   : > { %v1283_v47 = vadd.f32 %v1282_v22, %v1268_v32  ;;  %v1870_v23 = vpop.eup %1869  ;;  %v1257_v22 = vld [vmem:[%s2594_s11 + $0x38] sm:$0xff] }
 0x21c   : > { %v1220_v6 = vmul.f32 %v1870_v23, %v1204_v33  ;;  %v1046_v24 = vpop.xlane.xlu0 %1045  ;;  %v1258_v33 = vld [vmem:[%s2594_s11 + $0x40] sm:$0xff] }
 0x21d   : > { %v960_v20 = vpop.xlane.xlu2 %959  ;;  %v1205_v2 = vmul.f32 %v2582_v13, %v1046_v24 }
 0x21e   : > { %1871 = vrcp.f32 %v960_v20  ;;  %v1236_v4 = vadd.f32 %v1220_v6, %v1170_v25 }
 0x220   : > { %v1269_v53 = vmul.f32 %v1253_v10, %v1236_v4  ;;  %v1176_v4 = vmul.f32 %v2585_v9, %v2494_v8 }
 0x222   : > { %v1284_v62 = vadd.f32 %v1283_v47, %v1269_v53 }
 0x224   : > { %v1872_v57 = vpop.eup %1871  ;;  %v963_v45 = vpop.xlane.xlu0 %962 }
 0x225   : > { %v1221_v44 = vmul.f32 %v1872_v57, %v1205_v2  ;;  %1873 = vrcp.f32 %v963_v45  ;;  %v1049_v39 = vpop.xlane.xlu2 %1048 }
 0x226   : > { %v1206_v7 = vmul.f32 %v2582_v13, %v1049_v39 }
 0x227   : > { %v1237_v42 = vadd.f32 %v1221_v44, %v1171_v60  ;;  %v1177_v44 = vmul.f32 %v2585_v9, %v2484_v63 }
 0x229   : > { %v1270_v43 = vmul.f32 %v1254_v61, %v1237_v42  ;;  %v1260_v42 = vld [vmem:[%s2594_s11 + $0x50] sm:$0xff] }
 0x22a   : > { %v966_v12 = vpop.xlane.xlu1 %965 }
 0x22b   : > { %v1285_v3 = vadd.f32 %v1284_v62, %v1270_v43  ;;  %v1874_v16 = vpop.eup %1873  ;;  %1875 = vrcp.f32 %v966_v12  ;;  %v1259_v62 = vld [vmem:[%s2594_s11 + $0x48] sm:$0xff] }
 0x22c   : > { %v1222_v31 = vmul.f32 %v1874_v16, %v1206_v7 }
 0x22e   : > { %v1238_v55 = vadd.f32 %v1222_v31, %v1172_v30  ;;  %v1178_v31 = vmul.f32 %v2585_v9, %v2523_v40 }
 0x230   : > { %v1271_v36 = vmul.f32 %v1255_v54, %v1238_v55  ;;  %v1261_v55 = vld [vmem:[%s2594_s11 + $0x58] sm:$0xff] }
 0x231   : > { %v1876_v15 = vpop.eup %1875 }
 0x232   : > { %v969_v17 = vpop.xlane.xlu2 %968  ;;  %v1052_v49 = vpop.xlane.xlu1 %1051  ;;  %v1286_v51 = vadd.f32 %v1285_v3, %v1271_v36 }
 0x233   : > { %1877 = vrcp.f32 %v969_v17  ;;  %v1207_v11 = vmul.f32 %v2582_v13, %v1052_v49 }
 0x234   : > { %v1055_v19 = vpop.xlane.xlu0 %1054 }
 0x235   : > { %v1223_v52 = vmul.f32 %v1876_v15, %v1207_v11  ;;  %v1208_v0 = vmul.f32 %v2582_v13, %v1055_v19 }
 0x237   : > { %v1239_v29 = vadd.f32 %v1223_v52, %v1173_v48  ;;  %v1179_v48 = vmul.f32 %v2585_v9, %v2507_v46 }
 0x239   : > { %v1878_v5 = vpop.eup %1877  ;;  %v1272_v27 = vmul.f32 %v1256_v21, %v1239_v29  ;;  %v1262_v21 = vld [vmem:[%s2594_s11 + $0x60] sm:$0xff] }
 0x23a   : > { %v1224_v28 = vmul.f32 %v1878_v5, %v1208_v0 }
 0x23b   : > { %v1287_v14 = vadd.f32 %v1286_v51, %v1272_v27 }
 0x23c   : > { %v1240_v35 = vadd.f32 %v1224_v28, %v1174_v18  ;;  %v972_v26 = vpop.xlane.xlu0 %971  ;;  %v1058_v41 = vpop.xlane.xlu2 %1057 }
 0x23d   : > { %1879 = vrcp.f32 %v972_v26  ;;  %v1209_v34 = vmul.f32 %v2582_v13, %v1058_v41 }
 0x23e   : > { %v1273_v37 = vmul.f32 %v1257_v22, %v1240_v35 }
 0x240   : > { %v1288_v56 = vadd.f32 %v1287_v14, %v1273_v37 }
 0x242   : > { %v975_v58 = vpop.xlane.xlu1 %974 }
 0x243   : > { %v1880_v59 = vpop.eup %1879  ;;  %1881 = vrcp.f32 %v975_v58 }
 0x244   : > { %v1225_v32 = vmul.f32 %v1880_v59, %v1209_v34 }
 0x246   : > { %v1241_v50 = vadd.f32 %v1225_v32, %v1175_v38 }
 0x248   : > { %v1274_v47 = vmul.f32 %v1258_v33, %v1241_v50 }
 0x249   : > { %v1882_v24 = vpop.eup %1881 }
 0x24a   : > { %v978_v23 = vpop.xlane.xlu2 %977  ;;  %v1061_v25 = vpop.xlane.xlu1 %1060  ;;  %v1289_v6 = vadd.f32 %v1288_v56, %v1274_v47  ;;  %v1263_v56 = vld [vmem:[%s2594_s11 + $0x68] sm:$0xff] }
 0x24b   : > { %1883 = vrcp.f32 %v978_v23  ;;  %v1210_v20 = vmul.f32 %v2582_v13, %v1061_v25  ;;  %v1264_v23 = vld [vmem:[%s2594_s11 + $0x70] sm:$0xff] }
 0x24c   : > { %v1064_v10 = vpop.xlane.xlu0 %1063 }
 0x24d   : > { %v1226_v53 = vmul.f32 %v1882_v24, %v1210_v20  ;;  %v1211_v2 = vmul.f32 %v2582_v13, %v1064_v10  ;;  %v1265_v10 = vld [vmem:[%s2594_s11 + $0x78] sm:$0xff] }
 0x24f   : > { %v1242_v1 = vadd.f32 %v1226_v53, %v1176_v4 }
 0x251   : > { %v1884_v57 = vpop.eup %1883  ;;  %v1275_v60 = vmul.f32 %v1259_v62, %v1242_v1 }
 0x252   : > { %v1227_v45 = vmul.f32 %v1884_v57, %v1211_v2 }
 0x253   : > { %v1290_v61 = vadd.f32 %v1289_v6, %v1275_v60 }
 0x254   : > { %v1243_v39 = vadd.f32 %v1227_v45, %v1177_v44  ;;  %v981_v43 = vpop.xlane.xlu0 %980  ;;  %v1067_v7 = vpop.xlane.xlu2 %1066 }
 0x255   : > { %1885 = vrcp.f32 %v981_v43  ;;  %v1212_v12 = vmul.f32 %v2582_v13, %v1067_v7 }
 0x256   : > { %v1276_v3 = vmul.f32 %v1260_v42, %v1243_v39 }
 0x258   : > { %v1291_v8 = vadd.f32 %v1290_v61, %v1276_v3 }
 0x25a   : > { %v984_v16 = vpop.xlane.xlu1 %983 }
 0x25b   : > { %v1886_v30 = vpop.eup %1885  ;;  %1887 = vrcp.f32 %v984_v16 }
 0x25c   : > { %v1228_v54 = vmul.f32 %v1886_v30, %v1212_v12 }
 0x25e   : > { %v1244_v63 = vadd.f32 %v1228_v54, %v1178_v31 }
 0x260   : > { %v1277_v36 = vmul.f32 %v1261_v55, %v1244_v63 }
 0x261   : > { %v1888_v11 = vpop.eup %1887 }
 0x262   : > { %v1070_v17 = vpop.xlane.xlu1 %1069  ;;  %v1292_v49 = vadd.f32 %v1291_v8, %v1277_v36  ;;  %v987_v15 = vpop.xlane.xlu2 %986 }
 0x263   : > { %v1213_v51 = vmul.f32 %v2582_v13, %v1070_v17  ;;  %1889 = vrcp.f32 %v987_v15 }
 0x264   : > { %v1073_v19 = vpop.xlane.xlu0 %1072 }
 0x265   : > { %v1229_v52 = vmul.f32 %v1888_v11, %v1213_v51  ;;  %v1214_v14 = vmul.f32 %v2582_v13, %v1073_v19 }
 0x267   : > { %v1245_v29 = vadd.f32 %v1229_v52, %v1179_v48 }
 0x269   : > { %v1278_v0 = vmul.f32 %v1262_v21, %v1245_v29  ;;  %v1890_v18 = vpop.eup %1889 }
 0x26a   : > { %v1230_v37 = vmul.f32 %v1890_v18, %v1214_v14 }
 0x26b   : > { %v1293_v40 = vadd.f32 %v1292_v49, %v1278_v0 }
 0x26c   : > { %v1076_v5 = vpop.xlane.xlu2 %1075  ;;  %v990_v27 = vpop.xlane.xlu0 %989 }
 0x26d   : > { %1891 = vrcp.f32 %v990_v27  ;;  %v1215_v46 = vmul.f32 %v2582_v13, %v1076_v5 }
 0x272   : > { %v993_v28 = vpop.xlane.xlu1 %992 }
 0x273   : > { %v1892_v22 = vpop.eup %1891  ;;  %1893 = vrcp.f32 %v993_v28 }
 0x274   : > { %v1156_v35 = vpop.xlane.xlu2 %1155  ;;  %v1153_v26 = vpop.xlane.xlu0 %1152  ;;  %v1231_v58 = vmul.f32 %v1892_v22, %v1215_v46 }
 0x275   : > { %v1180_v41 = vmul.f32 %v2585_v9, %v1153_v26  ;;  %v1181_v34 = vmul.f32 %v2585_v9, %v1156_v35 }
 0x277   : > { %v1246_v59 = vadd.f32 %v1230_v37, %v1180_v41  ;;  %v1247_v33 = vadd.f32 %v1231_v58, %v1181_v34 }
 0x279   : > { %v1279_v38 = vmul.f32 %v1263_v56, %v1246_v59  ;;  %v1894_v47 = vpop.eup %1893  ;;  %v1280_v4 = vmul.f32 %v1264_v23, %v1247_v33 }
 0x27a   : > { %v1079_v32 = vpop.xlane.xlu1 %1078 }
 0x27b   : > { %v1216_v50 = vmul.f32 %v2582_v13, %v1079_v32  ;;  %v1294_v6 = vadd.f32 %v1293_v40, %v1279_v38 }
 0x27c   : > { %v1159_v25 = vpop.xlane.xlu0 %1158 }
 0x27d   : > { %v1232_v20 = vmul.f32 %v1894_v47, %v1216_v50  ;;  %v1182_v24 = vmul.f32 %v2585_v9, %v1159_v25  ;;  %v1295_v62 = vadd.f32 %v1294_v6, %v1280_v4 }
 0x27f   : > { %v1248_v53 = vadd.f32 %v1232_v20, %v1182_v24 }
 0x281   : > { %v1281_v1 = vmul.f32 %v1265_v10, %v1248_v53 }
 0x283   : > { %v1296_v2 = vadd.f32 %v1295_v62, %v1281_v1 }
 0x285   : > { %v1297_v57 = vrot.slane %v1296_v2, 4 }
 0x287   : > { %v1298_v60 = vadd.f32 %v1297_v57, %v1296_v2 }
 0x289   : > { %v1299_v44 = vrot.slane %v1298_v60, 2 }
 0x28b   : > { %v1300_v45 = vadd.f32 %v1299_v44, %v1298_v60  ;;  %1306 = sbr.rel (%p1647_p1) target bundleno = 658 (0x292), region = 56 }
 0x28d   : > { %v1301_v61 = vrot.slane %v1300_v45, 1 }
 0x28f   : > { %v1302_v13 = vadd.f32 %v1301_v61, %v1300_v45 }
 0x290   : > { %v1307_v9 = vld [vmem:[%s2703_s4] sm:$0x1] }
 0x291   : > { %1308 = vst [vmem:[%s311_s6] sm:$0x1] %v1307_v9 }
 0x292 PF: > { %s1321_s10 = scalar_lea.hbm %s2704_s5, %s2079_s24  ;;  %s1323_s18 = sshll.u32 %s311_s6, 4  ;;  %s1324_s18 = int_to_ptr.vmem [resolvable:$true] %s1323_s18 }
 0x293   : > { %s1325_s20 = sshll.u32 %s1321_s10, 4  ;;  %s1313_s23 = scalar_lea.sflag [#allocation5], %s2251_s19  ;;  %s1326_s20 = int_to_ptr.hbm [resolvable:$true] %s1325_s20 }
 0x294   : > { %s1999_s13 = sshra.s32 %s1326_s20, 4  ;;  %s2005_s9 = scalar_lea.hbm %s2704_s5, 2  ;;  %s2000_s13 = int_to_ptr.hbm [resolvable:$true] %s1999_s13 }
 0x295   : > { %s2001_s14 = scalar_lea.hbm %s2000_s13, 1  ;;  %p2006_p11 = scmp.lt.s32.totalorder %s2000_s13, %s2704_s5 }
 0x296   : > { %p2002_p4 = scmp.ne.s32.totalorder %s2000_s13, %s2001_s14  ;;  %p2007_p12 = scmp.lt.s32.totalorder %s2005_s9, %s2001_s14 }
 0x298   : > { %v1309_v42 = vld [vmem:[%s311_s6] sm:$0x1]  ;;  %p2003_p8 = pnand %p2002_p4, %p2215_p0  ;;  %p2008_p13 = por %p2007_p12, %p2006_p11 }
 0x299   : > { %v1310_v39 = vadd.f32 %v1309_v42, %v1302_v13 }
 0x29a   : > { %p2004_p10 = pneg %p2003_p8 }
 0x29b   : > { %1311 = vst [vmem:[%s311_s6] sm:$0x1] %v1310_v39 }
 0x29c   : > { %p2009_p3 = pnand %p2008_p13, %p2004_p10 }
 0x29e   : > { %2012 = shalt.err (!%p2009_p3)
}
 0x29f   : > { %1708 = dma.vmem_to_hbm [thread:$0]  (%p2215_p0), %s1324_s18, 16, %s1326_s20, %s1313_s23  }
 0x2a0 PF: > { %s2729_s19 = sld [smem:[#allocation14_spill]]  ;;  %p1728_p5 = scmp.ge.s32.totalorder %s2091_s0, 2 }
 0x2a2   : > { %p1722_p7 = pnand %p1728_p5, %p2185_p6 }
 0x2a4   : > { %p1723_p2 = pneg %p1722_p7 }
 0x2a6   : > { %s1337_s29 = sand.u32 1, %s2729_s19  }
 0x2a7   : > { %s1338_s17 = scalar_lea.sflag [#allocation5], %s1337_s29 }
 0x2a8   : > { %2058 = dma.done.wait (%p1723_p2), %s1338_s17, 16  }
 0x2a9   : > { %2060 = vsyncadd (%p1723_p2), %s1338_s17, 4294967280  ;;  %s25_s0 = sadd.s32 1, %s2091_s0   ;;  %s2731_s23 = sld [smem:[#allocation15_spill]] }
 0x2aa   : > { %p22_p9 = scmp.ge.s32.totalorder %s25_s0, 6   ;;  %s2732_s25 = sld [smem:[#allocation17_spill]] }
 0x2ab   : > { %s2733_s11 = sld [smem:[#allocation19_spill]]  ;;  %s2734_s20 = smov %s2067_s21 }
 0x2ac   : > { %s2735_s21 = smov %s2071_s22  ;;  %s2736_s22 = smov %s2234_s3 }
 0x2ad   : > { %s2737_s24 = smov %s2087_s26  ;;  %24 = sbr.rel (!%p22_p9) target bundleno = 12 (0xc), region = 108 }
 0x2b1   : > { %s2738_s26 = smov %s2733_s11 }
 0x2b2   :  { %1343 = vsyncpa [#allocation4], 1 }
 0x2b3   :  { %1345 = vsyncpa [#allocation4 + $0x1], 1 }
 0x2b4   :  { %1346 = vsyncpa [#allocation7], 1 }
 0x2b5   :  { %1348 = vsyncpa [#allocation7 + $0x1], 1 }
 0x2b6   :  { %1349 = vsyncpa [#allocation5], 1 }
 0x2b7   :  { %1351 = vsyncpa [#allocation5 + $0x1], 1 }

</bundles_post_ra>
